<compile_context>
chip_gen: v6e
topology: v6e:2x2x1
jax: 0.10.0
libtpu: 0.0.40
codegen_flags: <defaults>
</compile_context>

<pallas_src>
import functools

import jax
import jax.numpy as jnp
import numpy as np
from jax.experimental import pallas as pl
from jax.experimental.pallas import tpu as pltpu

BN_EPS = 1e-5
F_CONV = 16                      # every conv in the torch module has 16 filters


# ---------------------------------------------------------------------------
# Fused kernel: one grid step == TB batch elements, packed on the lane axis.
# ---------------------------------------------------------------------------
def _cnn_fused_kernel(x_ref, w1_ref, b1_ref, w2_ref, b2_ref, w3_ref, b3_ref,
                      fcg_ref, fcb_ref, seg_ref, o_ref, a1_scr, a2_scr, *,
                      wavelet, kL, N, n_classes):
    f32 = jnp.float32
    r2 = a2_scr.shape[0]                       # 16 * Ho3 (= 128) output rows

    # Scratch tail lanes [N, N+kL) feed only dead lanes, but they must stay
    # finite (0 * NaN == NaN would leak through the FC masking) -> clear them.
    a1_scr[...] = jnp.zeros(a1_scr.shape, f32)
    a2_scr[...] = jnp.zeros(a2_scr.shape, f32)

    w1s = w1_ref[...]                          # (Ho3, kL*Cp), even channels only
    b1c = b1_ref[...]                          # (Ho3, 1)

    # ---- conv1 + conv2, fused over wavelet rows -----------------------------
    # conv2 is one M=128 matmul per wavelet row (block-diagonal over the 8
    # surviving conv1 channels), accumulated into acc2.
    acc2 = jnp.zeros((r2, N), f32)
    for h in range(wavelet):
        # TODO(synk): for large kernLength, chunk the tap stacking with a
        #             lax.fori_loop instead of fully unrolling.
        stack1 = jnp.concatenate(
            [x_ref[0, h, :, pl.ds(t, N)] for t in range(kL)], axis=0)
        a1_h = jnp.maximum(
            jnp.dot(w1s, stack1, preferred_element_type=f32) + b1c, 0.0)
        a1_scr[:, pl.ds(0, N)] = a1_h          # stage so conv2 reads ref slices
        stack2 = jnp.concatenate(
            [a1_scr[:, pl.ds(t, N)] for t in range(kL)], axis=0)
        acc2 = acc2 + jnp.dot(w2_ref[h], stack2, preferred_element_type=f32)

    a2_all = jnp.maximum(acc2 + b2_ref[...], 0.0)            # (128, N)
    a2_scr[:, pl.ds(0, N)] = a2_all

    # ---- conv3: per-tap K=128 dots, uninterrupted accumulation chain --------
    acc3 = jnp.dot(w3_ref[0], a2_scr[:, pl.ds(0, N)],
                   preferred_element_type=f32)
    for t in range(1, kL):
        acc3 = acc3 + jnp.dot(w3_ref[t], a2_scr[:, pl.ds(t, N)],
                              preferred_element_type=f32)
    a3_all = jnp.maximum(acc3 + b3_ref[...], 0.0)            # (128, N)

    # ---- flatten + FC --------------------------------------------------------
    # Hadamard with lane-grid FC weights (zero off the stride-2/valid lanes),
    # sublane reduce, then one small matmul against the segment-indicator
    # matrix gives the per-batch sums.  Single (n_classes, TB) store.
    rows = [jnp.sum(a3_all * fcg_ref[n], axis=0, keepdims=True)
            for n in range(n_classes)]
    rows_all = rows[0] if n_classes == 1 else jnp.concatenate(rows, axis=0)
    logits_t = jnp.dot(rows_all, seg_ref[...],
                       preferred_element_type=f32) + fcb_ref[...]
    o_ref[0] = logits_t


# ---------------------------------------------------------------------------
# Wrapper: trace-time weight prep (BN fold, block-diag layouts) + pallas_call.
# ---------------------------------------------------------------------------
def _pick_tb(B, Samples, target_lanes=512):
    """Largest divisor of B with TB*Samples <= target_lanes, preferring >=2 steps."""
    cap = max(1, target_lanes // max(Samples, 1))
    divisors = [d for d in range(1, B + 1) if B % d == 0 and d <= cap]
    if not divisors:
        return 1
    multi = [d for d in divisors if B // d >= 2]
    return max(multi) if multi else max(divisors)


def model_forward(x, params, *, kernLength):
    """modelType('CNN').forward (eval) — x: (B, wavelet, Samples, Chans)."""
    x = x.astype(jnp.float32)
    B, wavelet, Samples, Chans = x.shape
    F = F_CONV
    kL = kernLength
    S1 = Samples - kL + 1                       # conv1 output width
    S2 = S1 - kL + 1                            # conv2 output width
    Ho3 = (F - 1) // 2 + 1                      # conv3 output height (== 8)
    Wo3 = (S2 - kL) // 2 + 1                    # conv3 output width (stride 2)
    n_classes = params["fc_w"].shape[1]

    # Trace-time checks of the geometry assumptions baked into the kernel.
    assert S1 >= 1 and S2 >= 1 and S2 - kL >= 0 and Wo3 >= 1, \
        "Samples too short for three VALID convolutions"
    assert params["w1"].shape == (F, Chans, 1, kL)
    assert params["w2"].shape == (F, wavelet, 1, kL)
    assert params["w3"].shape == (F, F, 1, kL)
    assert params["fc_w"].shape[0] == F * Ho3 * Wo3

    TB = _pick_tb(B, Samples)
    Bg = B // TB
    N = TB * Samples                            # lane width (batch x time)
    Cp = ((Chans + 7) // 8) * 8                 # pad channels to a sublane tile
    Npad = N + kL                               # lane tail so shifted reads stay in-bounds
    R2 = F * Ho3                                # 128 rows for conv2/conv3 outputs
    f32 = jnp.float32

    # ---- fold BatchNorm2d(affine=False) eval stats + conv bias --------------
    inv1 = 1.0 / jnp.sqrt(params["rv1"] + BN_EPS)
    inv2 = 1.0 / jnp.sqrt(params["rv2"] + BN_EPS)
    inv3 = 1.0 / jnp.sqrt(params["rv3"] + BN_EPS)
    w1f = params["w1"][:, :, 0, :] * inv1[:, None, None]     # (16, Chans, kL)
    b1f = (params["b1"] - params["rm1"]) * inv1
    w2f = params["w2"][:, :, 0, :] * inv2[:, None, None]     # (16, wavelet, kL)
    b2f = (params["b2"] - params["rm2"]) * inv2
    w3f = params["w3"][:, :, 0, :] * inv3[:, None, None]     # (16, 16, kL)
    b3f = (params["b3"] - params["rm3"]) * inv3

    # conv1: only even output channels survive conv3's H-stride of 2.
    w1e = jnp.transpose(w1f[0::2], (0, 2, 1))                # (Ho3, kL, Chans)
    w1e = jnp.pad(w1e, ((0, 0), (0, 0), (0, Cp - Chans)))
    w1s = w1e.reshape(Ho3, kL * Cp)                          # col = t*Cp + c
    b1c = b1f[0::2][:, None]                                 # (Ho3, 1)

    eye = jnp.eye(Ho3, dtype=f32)
    # conv2 / conv3: block-diagonal over the fe axis so every grid step does
    # M=128 matmuls instead of 8 tiny per-row ones (zeros ride free on the MXU).
    w2b = (jnp.transpose(w2f, (1, 0, 2))[:, :, None, :, None]
           * eye[None, None, :, None, :])                    # (wav,16,Ho3,kL,Ho3)
    w2b = w2b.reshape(wavelet, R2, kL * Ho3)                 # row g*8+fe, col t*8+fe
    b2c = jnp.repeat(b2f, Ho3)[:, None]                      # (128, 1)

    w3b = (jnp.transpose(w3f, (2, 0, 1))[:, :, None, :, None]
           * eye[None, None, :, None, :])                    # (kL,16,Ho3,16,Ho3)
    w3b = w3b.reshape(kL, R2, R2)                            # row o*8+fe, col g*8+fe
    b3c = jnp.repeat(b3f, Ho3)[:, None]                      # (128, 1)

    # FC weights on the conv3 stride-1 lane grid (nonzero only at stride-2
    # sample positions), replicated across the TB batch segments.
    fc3 = params["fc_w"].T.reshape(n_classes, F, Ho3, Wo3)   # [n, o, fe, w]
    fcg = jnp.zeros((n_classes, F, Ho3, Samples), f32)
    fcg = fcg.at[..., 0:2 * Wo3:2].set(fc3)
    fcg = jnp.tile(fcg.reshape(n_classes, R2, 1, Samples), (1, 1, TB, 1))
    fcg = fcg.reshape(n_classes, R2, N)
    fcb = params["fc_b"][:, None]                            # (n_classes, 1)
    seg = jnp.repeat(jnp.eye(TB, dtype=f32), Samples, axis=0)  # (N, TB)

    # Input relayout (single XLA pass): (B, wavelet, Samples, Chans)
    #   -> (Bg, wavelet, Cp, TB*Samples + kL), lane index = b*Samples + s.
    xt = jnp.transpose(x, (0, 1, 3, 2))
    xt = jnp.pad(xt, ((0, 0), (0, 0), (0, Cp - Chans), (0, 0)))
    xt = xt.reshape(Bg, TB, wavelet, Cp, Samples)
    xt = jnp.transpose(xt, (0, 2, 3, 1, 4)).reshape(Bg, wavelet, Cp, N)
    x_packed = jnp.pad(xt, ((0, 0), (0, 0), (0, 0), (0, kL)))

    kernel = functools.partial(_cnn_fused_kernel, wavelet=wavelet, kL=kL,
                               N=N, n_classes=n_classes)

    out = pl.pallas_call(
        kernel,
        out_shape=jax.ShapeDtypeStruct((Bg, n_classes, TB), f32),
        grid=(Bg,),
        in_specs=[
            pl.BlockSpec((1, wavelet, Cp, Npad), lambda i: (i, 0, 0, 0)),
            pl.BlockSpec((Ho3, kL * Cp), lambda i: (0, 0)),
            pl.BlockSpec((Ho3, 1), lambda i: (0, 0)),
            pl.BlockSpec((wavelet, R2, kL * Ho3), lambda i: (0, 0, 0)),
            pl.BlockSpec((R2, 1), lambda i: (0, 0)),
            pl.BlockSpec((kL, R2, R2), lambda i: (0, 0, 0)),
            pl.BlockSpec((R2, 1), lambda i: (0, 0)),
            pl.BlockSpec((n_classes, R2, N), lambda i: (0, 0, 0)),
            pl.BlockSpec((n_classes, 1), lambda i: (0, 0)),
            pl.BlockSpec((N, TB), lambda i: (0, 0)),
        ],
        out_specs=pl.BlockSpec((1, n_classes, TB), lambda i: (i, 0, 0)),
        scratch_shapes=[
            pltpu.VMEM((Ho3, Npad), f32),          # conv1 row staging
            pltpu.VMEM((R2, Npad), f32),           # conv2 output staging
        ],
        compiler_params=pltpu.CompilerParams(
            dimension_semantics=("parallel",)),
    )(x_packed, w1s, b1c, w2b, b2c, w3b, b3c, fcg, fcb, seg)

    logits = jnp.transpose(out, (0, 2, 1)).reshape(B, n_classes)
    return logits, None


# ---------------------------------------------------------------------------
# Parameters (mirrors the PyTorch module, eval mode) and pure-JAX reference.
# ---------------------------------------------------------------------------
def init_params(key, *, Chans, wavelet, kernLength, Samples, n_classes):
    ks = jax.random.split(key, 8)
    F = F_CONV
    w1 = jax.random.normal(ks[0], (F, Chans, 1, kernLength), jnp.float32) * 0.1
    b1 = jax.random.normal(ks[1], (F,), jnp.float32) * 0.1
    w2 = jax.random.normal(ks[2], (F, wavelet, 1, kernLength), jnp.float32) * 0.1
    b2 = jax.random.normal(ks[3], (F,), jnp.float32) * 0.1
    w3 = jax.random.normal(ks[4], (F, F, 1, kernLength), jnp.float32) * 0.1
    b3 = jax.random.normal(ks[5], (F,), jnp.float32) * 0.1
    S1 = Samples - kernLength + 1
    S2 = S1 - kernLength + 1
    Ho3 = (F - 1) // 2 + 1
    Wo3 = (S2 - kernLength) // 2 + 1
    flat = F * Ho3 * Wo3
    fc_w = jax.random.normal(ks[6], (flat, n_classes), jnp.float32) * 0.05
    fc_b = jax.random.normal(ks[7], (n_classes,), jnp.float32) * 0.05
    zeros = jnp.zeros((F,), jnp.float32)
    ones = jnp.ones((F,), jnp.float32)
    return dict(w1=w1, b1=b1, w2=w2, b2=b2, w3=w3, b3=b3, fc_w=fc_w, fc_b=fc_b,
                rm1=zeros, rv1=ones, rm2=zeros, rv2=ones, rm3=zeros, rv3=ones)


def _ref_conv_bn_relu(x, w, b, rm, rv, stride):
    out = jax.lax.conv_general_dilated(
        x, w, window_strides=stride, padding="VALID",
        dimension_numbers=("NCHW", "OIHW", "NCHW"),
        precision=jax.lax.Precision.HIGHEST)
    out = out + b[None, :, None, None]
    out = (out - rm[None, :, None, None]) / jnp.sqrt(rv[None, :, None, None] + BN_EPS)
    return jnp.maximum(out, 0.0)


def ref_forward(x, params, *, kernLength):
    B = x.shape[0]
    h = jnp.transpose(x, (0, 3, 1, 2))
    h = _ref_conv_bn_relu(h, params["w1"], params["b1"],
                          params["rm1"], params["rv1"], (1, 1))
    h = jnp.transpose(h, (0, 2, 1, 3))
    h = _ref_conv_bn_relu(h, params["w2"], params["b2"],
                          params["rm2"], params["rv2"], (1, 1))
    h = _ref_conv_bn_relu(h, params["w3"], params["b3"],
                          params["rm3"], params["rv3"], (2, 2))
    flat = h.reshape(B, -1)
    return jnp.dot(flat, params["fc_w"],
                   precision=jax.lax.Precision.HIGHEST) + params["fc_b"][None, :]


# ---------------------------------------------------------------------------
if __name__ == "__main__":
    B, wavelet, Samples, Chans = 16, 3, 16, 4
    kernLength, n_classes = 3, 2

    key = jax.random.PRNGKey(0)
    kx, kp = jax.random.split(key)
    x = jax.random.normal(kx, (B, wavelet, Samples, Chans), jnp.float32)
    params = init_params(kp, Chans=Chans, wavelet=wavelet,
                         kernLength=kernLength, Samples=Samples,
                         n_classes=n_classes)

    fwd = jax.jit(functools.partial(model_forward, kernLength=kernLength))
    logits, _ = fwd(x, params)
    logits = jax.block_until_ready(logits)

    ref = jax.block_until_ready(ref_forward(x, params, kernLength=kernLength))
    np.testing.assert_allclose(np.asarray(logits), np.asarray(ref),
                               rtol=2e-4, atol=2e-4)
    print("KERNEL_OK")
</pallas_src>

<mosaic_0001>
module attributes {stable_mosaic.version = 11 : i64} {
  func.func @_cnn_fused_kernel(%arg0: i32, %arg1: memref<1x3x8x131xf32, #tpu.memory_space<vmem>>, %arg2: memref<8x24xf32, #tpu.memory_space<vmem>>, %arg3: memref<8x1xf32, #tpu.memory_space<vmem>>, %arg4: memref<3x128x24xf32, #tpu.memory_space<vmem>>, %arg5: memref<128x1xf32, #tpu.memory_space<vmem>>, %arg6: memref<3x128x128xf32, #tpu.memory_space<vmem>>, %arg7: memref<128x1xf32, #tpu.memory_space<vmem>>, %arg8: memref<2x128x128xf32, #tpu.memory_space<vmem>>, %arg9: memref<2x1xf32, #tpu.memory_space<vmem>>, %arg10: memref<128x8xf32, #tpu.memory_space<vmem>>, %arg11: memref<1x2x8xf32, #tpu.memory_space<vmem>>, %arg12: memref<8x131xf32, #tpu.memory_space<vmem>>, %arg13: memref<128x131xf32, #tpu.memory_space<vmem>>) attributes {dimension_semantics = [#tpu.dimension_semantics<parallel>], iteration_bounds = array<i64: 2>, scalar_prefetch = 0 : i64, scratch_operands = 2 : i64, tpu.core_type = #tpu.core_type<tc>, window_params = [{transform_indices = @transform_0, window_bounds = array<i64: 1, 3, 8, 131>}, {pipeline_mode = #tpu.pipeline_mode<synchronous>, transform_indices = @transform_1, window_bounds = array<i64: 8, 24>}, {pipeline_mode = #tpu.pipeline_mode<synchronous>, transform_indices = @transform_2, window_bounds = array<i64: 8, 1>}, {pipeline_mode = #tpu.pipeline_mode<synchronous>, transform_indices = @transform_3, window_bounds = array<i64: 3, 128, 24>}, {pipeline_mode = #tpu.pipeline_mode<synchronous>, transform_indices = @transform_4, window_bounds = array<i64: 128, 1>}, {pipeline_mode = #tpu.pipeline_mode<synchronous>, transform_indices = @transform_5, window_bounds = array<i64: 3, 128, 128>}, {pipeline_mode = #tpu.pipeline_mode<synchronous>, transform_indices = @transform_6, window_bounds = array<i64: 128, 1>}, {pipeline_mode = #tpu.pipeline_mode<synchronous>, transform_indices = @transform_7, window_bounds = array<i64: 2, 128, 128>}, {pipeline_mode = #tpu.pipeline_mode<synchronous>, transform_indices = @transform_8, window_bounds = array<i64: 2, 1>}, {pipeline_mode = #tpu.pipeline_mode<synchronous>, transform_indices = @transform_9, window_bounds = array<i64: 128, 8>}, {transform_indices = @transform_10, window_bounds = array<i64: 1, 2, 8>}]} {
    %cst = arith.constant 0.000000e+00 : f32
    %0 = vector.broadcast %cst : f32 to vector<8x131xf32>
    %c0 = arith.constant 0 : index
    %c0_0 = arith.constant 0 : index
    %1 = vector.load %arg12[%c0, %c0_0] : memref<8x131xf32, #tpu.memory_space<vmem>>, vector<8x131xf32>
    tpu.vector_store %arg12[%c0, %c0_0], %0 {strides = array<i32>} : memref<8x131xf32, #tpu.memory_space<vmem>>, vector<8x131xf32>,
    %cst_1 = arith.constant 0.000000e+00 : f32
    %2 = vector.broadcast %cst_1 : f32 to vector<128x131xf32>
    %c0_2 = arith.constant 0 : index
    %c0_3 = arith.constant 0 : index
    %3 = vector.load %arg13[%c0_2, %c0_3] : memref<128x131xf32, #tpu.memory_space<vmem>>, vector<128x131xf32>
    tpu.vector_store %arg13[%c0_2, %c0_3], %2 {strides = array<i32>} : memref<128x131xf32, #tpu.memory_space<vmem>>, vector<128x131xf32>,
    %c0_4 = arith.constant 0 : index
    %c0_5 = arith.constant 0 : index
    %4 = vector.load %arg2[%c0_4, %c0_5] : memref<8x24xf32, #tpu.memory_space<vmem>>, vector<8x24xf32>
    %c0_6 = arith.constant 0 : index
    %c0_7 = arith.constant 0 : index
    %5 = vector.load %arg3[%c0_6, %c0_7] : memref<8x1xf32, #tpu.memory_space<vmem>>, vector<8x1xf32>
    %cst_8 = arith.constant 0.000000e+00 : f32
    %6 = vector.broadcast %cst_8 : f32 to vector<128x128xf32>
    %c0_9 = arith.constant 0 : index
    %c0_10 = arith.constant 0 : index
    %c0_11 = arith.constant 0 : index
    %c0_12 = arith.constant 0 : index
    %7 = vector.load %arg1[%c0_9, %c0_10, %c0_11, %c0_12] : memref<1x3x8x131xf32, #tpu.memory_space<vmem>>, vector<1x1x8x128xf32>
    %8 = vector.shape_cast %7 : vector<1x1x8x128xf32> to vector<8x128xf32>
    %c0_13 = arith.constant 0 : index
    %c0_14 = arith.constant 0 : index
    %c0_15 = arith.constant 0 : index
    %c1 = arith.constant 1 : index
    %9 = vector.load %arg1[%c0_13, %c0_14, %c0_15, %c1] : memref<1x3x8x131xf32, #tpu.memory_space<vmem>>, vector<1x1x8x128xf32>
    %10 = vector.shape_cast %9 : vector<1x1x8x128xf32> to vector<8x128xf32>
    %c0_16 = arith.constant 0 : index
    %c0_17 = arith.constant 0 : index
    %c0_18 = arith.constant 0 : index
    %c2 = arith.constant 2 : index
    %11 = vector.load %arg1[%c0_16, %c0_17, %c0_18, %c2] : memref<1x3x8x131xf32, #tpu.memory_space<vmem>>, vector<1x1x8x128xf32>
    %12 = vector.shape_cast %11 : vector<1x1x8x128xf32> to vector<8x128xf32>
    %13 = tpu.concatenate %8, %10, %12 in 0 : vector<8x128xf32>, vector<8x128xf32>, vector<8x128xf32> -> vector<24x128xf32>
    %cst_19 = arith.constant dense<0.000000e+00> : vector<8x128xf32>
    %14 = tpu.matmul %4, %13, %cst_19 {dimension_numbers = #tpu.dot_dimension_numbers<[1], [0], [0], [1], [0, 0, 1, 1], [], []>} : vector<8x24xf32>, vector<24x128xf32>, vector<8x128xf32> -> vector<8x128xf32>
    %15 = vector.broadcast %5 : vector<8x1xf32> to vector<8x128xf32>
    %16 = arith.addf %14, %15 : vector<8x128xf32>
    %cst_20 = arith.constant 0.000000e+00 : f32
    %17 = vector.broadcast %cst_20 : f32 to vector<8x128xf32>
    %18 = arith.maximumf %16, %17 : vector<8x128xf32>
    %c0_21 = arith.constant 0 : index
    %c0_22 = arith.constant 0 : index
    %19 = vector.load %arg12[%c0_21, %c0_22] : memref<8x131xf32, #tpu.memory_space<vmem>>, vector<8x128xf32>
    tpu.vector_store %arg12[%c0_21, %c0_22], %18 {strides = array<i32>} : memref<8x131xf32, #tpu.memory_space<vmem>>, vector<8x128xf32>,
    %c0_23 = arith.constant 0 : index
    %c0_24 = arith.constant 0 : index
    %20 = vector.load %arg12[%c0_23, %c0_24] : memref<8x131xf32, #tpu.memory_space<vmem>>, vector<8x128xf32>
    %c0_25 = arith.constant 0 : index
    %c1_26 = arith.constant 1 : index
    %21 = vector.load %arg12[%c0_25, %c1_26] : memref<8x131xf32, #tpu.memory_space<vmem>>, vector<8x128xf32>
    %c0_27 = arith.constant 0 : index
    %c2_28 = arith.constant 2 : index
    %22 = vector.load %arg12[%c0_27, %c2_28] : memref<8x131xf32, #tpu.memory_space<vmem>>, vector<8x128xf32>
    %23 = tpu.concatenate %20, %21, %22 in 0 : vector<8x128xf32>, vector<8x128xf32>, vector<8x128xf32> -> vector<24x128xf32>
    %c0_29 = arith.constant 0 : index
    %c0_30 = arith.constant 0 : index
    %c0_31 = arith.constant 0 : index
    %24 = vector.load %arg4[%c0_29, %c0_30, %c0_31] : memref<3x128x24xf32, #tpu.memory_space<vmem>>, vector<1x128x24xf32>
    %25 = vector.shape_cast %24 : vector<1x128x24xf32> to vector<128x24xf32>
    %cst_32 = arith.constant dense<0.000000e+00> : vector<128x128xf32>
    %26 = tpu.matmul %25, %23, %cst_32 {dimension_numbers = #tpu.dot_dimension_numbers<[1], [0], [0], [1], [0, 0, 1, 1], [], []>} : vector<128x24xf32>, vector<24x128xf32>, vector<128x128xf32> -> vector<128x128xf32>
    %27 = arith.addf %6, %26 : vector<128x128xf32>
    %c0_33 = arith.constant 0 : index
    %c1_34 = arith.constant 1 : index
    %c0_35 = arith.constant 0 : index
    %c0_36 = arith.constant 0 : index
    %28 = vector.load %arg1[%c0_33, %c1_34, %c0_35, %c0_36] : memref<1x3x8x131xf32, #tpu.memory_space<vmem>>, vector<1x1x8x128xf32>
    %29 = vector.shape_cast %28 : vector<1x1x8x128xf32> to vector<8x128xf32>
    %c0_37 = arith.constant 0 : index
    %c1_38 = arith.constant 1 : index
    %c0_39 = arith.constant 0 : index
    %c1_40 = arith.constant 1 : index
    %30 = vector.load %arg1[%c0_37, %c1_38, %c0_39, %c1_40] : memref<1x3x8x131xf32, #tpu.memory_space<vmem>>, vector<1x1x8x128xf32>
    %31 = vector.shape_cast %30 : vector<1x1x8x128xf32> to vector<8x128xf32>
    %c0_41 = arith.constant 0 : index
    %c1_42 = arith.constant 1 : index
    %c0_43 = arith.constant 0 : index
    %c2_44 = arith.constant 2 : index
    %32 = vector.load %arg1[%c0_41, %c1_42, %c0_43, %c2_44] : memref<1x3x8x131xf32, #tpu.memory_space<vmem>>, vector<1x1x8x128xf32>
    %33 = vector.shape_cast %32 : vector<1x1x8x128xf32> to vector<8x128xf32>
    %34 = tpu.concatenate %29, %31, %33 in 0 : vector<8x128xf32>, vector<8x128xf32>, vector<8x128xf32> -> vector<24x128xf32>
    %cst_45 = arith.constant dense<0.000000e+00> : vector<8x128xf32>
    %35 = tpu.matmul %4, %34, %cst_45 {dimension_numbers = #tpu.dot_dimension_numbers<[1], [0], [0], [1], [0, 0, 1, 1], [], []>} : vector<8x24xf32>, vector<24x128xf32>, vector<8x128xf32> -> vector<8x128xf32>
    %36 = vector.broadcast %5 : vector<8x1xf32> to vector<8x128xf32>
    %37 = arith.addf %35, %36 : vector<8x128xf32>
    %cst_46 = arith.constant 0.000000e+00 : f32
    %38 = vector.broadcast %cst_46 : f32 to vector<8x128xf32>
    %39 = arith.maximumf %37, %38 : vector<8x128xf32>
    %c0_47 = arith.constant 0 : index
    %c0_48 = arith.constant 0 : index
    %40 = vector.load %arg12[%c0_47, %c0_48] : memref<8x131xf32, #tpu.memory_space<vmem>>, vector<8x128xf32>
    tpu.vector_store %arg12[%c0_47, %c0_48], %39 {strides = array<i32>} : memref<8x131xf32, #tpu.memory_space<vmem>>, vector<8x128xf32>,
    %c0_49 = arith.constant 0 : index
    %c0_50 = arith.constant 0 : index
    %41 = vector.load %arg12[%c0_49, %c0_50] : memref<8x131xf32, #tpu.memory_space<vmem>>, vector<8x128xf32>
    %c0_51 = arith.constant 0 : index
    %c1_52 = arith.constant 1 : index
    %42 = vector.load %arg12[%c0_51, %c1_52] : memref<8x131xf32, #tpu.memory_space<vmem>>, vector<8x128xf32>
    %c0_53 = arith.constant 0 : index
    %c2_54 = arith.constant 2 : index
    %43 = vector.load %arg12[%c0_53, %c2_54] : memref<8x131xf32, #tpu.memory_space<vmem>>, vector<8x128xf32>
    %44 = tpu.concatenate %41, %42, %43 in 0 : vector<8x128xf32>, vector<8x128xf32>, vector<8x128xf32> -> vector<24x128xf32>
    %c1_55 = arith.constant 1 : index
    %c0_56 = arith.constant 0 : index
    %c0_57 = arith.constant 0 : index
    %45 = vector.load %arg4[%c1_55, %c0_56, %c0_57] : memref<3x128x24xf32, #tpu.memory_space<vmem>>, vector<1x128x24xf32>
    %46 = vector.shape_cast %45 : vector<1x128x24xf32> to vector<128x24xf32>
    %cst_58 = arith.constant dense<0.000000e+00> : vector<128x128xf32>
    %47 = tpu.matmul %46, %44, %cst_58 {dimension_numbers = #tpu.dot_dimension_numbers<[1], [0], [0], [1], [0, 0, 1, 1], [], []>} : vector<128x24xf32>, vector<24x128xf32>, vector<128x128xf32> -> vector<128x128xf32>
    %48 = arith.addf %27, %47 : vector<128x128xf32>
    %c0_59 = arith.constant 0 : index
    %c2_60 = arith.constant 2 : index
    %c0_61 = arith.constant 0 : index
    %c0_62 = arith.constant 0 : index
    %49 = vector.load %arg1[%c0_59, %c2_60, %c0_61, %c0_62] : memref<1x3x8x131xf32, #tpu.memory_space<vmem>>, vector<1x1x8x128xf32>
    %50 = vector.shape_cast %49 : vector<1x1x8x128xf32> to vector<8x128xf32>
    %c0_63 = arith.constant 0 : index
    %c2_64 = arith.constant 2 : index
    %c0_65 = arith.constant 0 : index
    %c1_66 = arith.constant 1 : index
    %51 = vector.load %arg1[%c0_63, %c2_64, %c0_65, %c1_66] : memref<1x3x8x131xf32, #tpu.memory_space<vmem>>, vector<1x1x8x128xf32>
    %52 = vector.shape_cast %51 : vector<1x1x8x128xf32> to vector<8x128xf32>
    %c0_67 = arith.constant 0 : index
    %c2_68 = arith.constant 2 : index
    %c0_69 = arith.constant 0 : index
    %c2_70 = arith.constant 2 : index
    %53 = vector.load %arg1[%c0_67, %c2_68, %c0_69, %c2_70] : memref<1x3x8x131xf32, #tpu.memory_space<vmem>>, vector<1x1x8x128xf32>
    %54 = vector.shape_cast %53 : vector<1x1x8x128xf32> to vector<8x128xf32>
    %55 = tpu.concatenate %50, %52, %54 in 0 : vector<8x128xf32>, vector<8x128xf32>, vector<8x128xf32> -> vector<24x128xf32>
    %cst_71 = arith.constant dense<0.000000e+00> : vector<8x128xf32>
    %56 = tpu.matmul %4, %55, %cst_71 {dimension_numbers = #tpu.dot_dimension_numbers<[1], [0], [0], [1], [0, 0, 1, 1], [], []>} : vector<8x24xf32>, vector<24x128xf32>, vector<8x128xf32> -> vector<8x128xf32>
    %57 = vector.broadcast %5 : vector<8x1xf32> to vector<8x128xf32>
    %58 = arith.addf %56, %57 : vector<8x128xf32>
    %cst_72 = arith.constant 0.000000e+00 : f32
    %59 = vector.broadcast %cst_72 : f32 to vector<8x128xf32>
    %60 = arith.maximumf %58, %59 : vector<8x128xf32>
    %c0_73 = arith.constant 0 : index
    %c0_74 = arith.constant 0 : index
    %61 = vector.load %arg12[%c0_73, %c0_74] : memref<8x131xf32, #tpu.memory_space<vmem>>, vector<8x128xf32>
    tpu.vector_store %arg12[%c0_73, %c0_74], %60 {strides = array<i32>} : memref<8x131xf32, #tpu.memory_space<vmem>>, vector<8x128xf32>,
    %c0_75 = arith.constant 0 : index
    %c0_76 = arith.constant 0 : index
    %62 = vector.load %arg12[%c0_75, %c0_76] : memref<8x131xf32, #tpu.memory_space<vmem>>, vector<8x128xf32>
    %c0_77 = arith.constant 0 : index
    %c1_78 = arith.constant 1 : index
    %63 = vector.load %arg12[%c0_77, %c1_78] : memref<8x131xf32, #tpu.memory_space<vmem>>, vector<8x128xf32>
    %c0_79 = arith.constant 0 : index
    %c2_80 = arith.constant 2 : index
    %64 = vector.load %arg12[%c0_79, %c2_80] : memref<8x131xf32, #tpu.memory_space<vmem>>, vector<8x128xf32>
    %65 = tpu.concatenate %62, %63, %64 in 0 : vector<8x128xf32>, vector<8x128xf32>, vector<8x128xf32> -> vector<24x128xf32>
    %c2_81 = arith.constant 2 : index
    %c0_82 = arith.constant 0 : index
    %c0_83 = arith.constant 0 : index
    %66 = vector.load %arg4[%c2_81, %c0_82, %c0_83] : memref<3x128x24xf32, #tpu.memory_space<vmem>>, vector<1x128x24xf32>
    %67 = vector.shape_cast %66 : vector<1x128x24xf32> to vector<128x24xf32>
    %cst_84 = arith.constant dense<0.000000e+00> : vector<128x128xf32>
    %68 = tpu.matmul %67, %65, %cst_84 {dimension_numbers = #tpu.dot_dimension_numbers<[1], [0], [0], [1], [0, 0, 1, 1], [], []>} : vector<128x24xf32>, vector<24x128xf32>, vector<128x128xf32> -> vector<128x128xf32>
    %69 = arith.addf %48, %68 : vector<128x128xf32>
    %c0_85 = arith.constant 0 : index
    %c0_86 = arith.constant 0 : index
    %70 = vector.load %arg5[%c0_85, %c0_86] : memref<128x1xf32, #tpu.memory_space<vmem>>, vector<128x1xf32>
    %71 = vector.broadcast %70 : vector<128x1xf32> to vector<128x128xf32>
    %72 = arith.addf %69, %71 : vector<128x128xf32>
    %cst_87 = arith.constant 0.000000e+00 : f32
    %73 = vector.broadcast %cst_87 : f32 to vector<128x128xf32>
    %74 = arith.maximumf %72, %73 : vector<128x128xf32>
    %c0_88 = arith.constant 0 : index
    %c0_89 = arith.constant 0 : index
    %75 = vector.load %arg13[%c0_88, %c0_89] : memref<128x131xf32, #tpu.memory_space<vmem>>, vector<128x128xf32>
    tpu.vector_store %arg13[%c0_88, %c0_89], %74 {strides = array<i32>} : memref<128x131xf32, #tpu.memory_space<vmem>>, vector<128x128xf32>,
    %c0_90 = arith.constant 0 : index
    %c0_91 = arith.constant 0 : index
    %c0_92 = arith.constant 0 : index
    %76 = vector.load %arg6[%c0_90, %c0_91, %c0_92] : memref<3x128x128xf32, #tpu.memory_space<vmem>>, vector<1x128x128xf32>
    %77 = vector.shape_cast %76 : vector<1x128x128xf32> to vector<128x128xf32>
    %c0_93 = arith.constant 0 : index
    %c0_94 = arith.constant 0 : index
    %78 = vector.load %arg13[%c0_93, %c0_94] : memref<128x131xf32, #tpu.memory_space<vmem>>, vector<128x128xf32>
    %cst_95 = arith.constant dense<0.000000e+00> : vector<128x128xf32>
    %79 = tpu.matmul %77, %78, %cst_95 {dimension_numbers = #tpu.dot_dimension_numbers<[1], [0], [0], [1], [0, 0, 1, 1], [], []>} : vector<128x128xf32>, vector<128x128xf32>, vector<128x128xf32> -> vector<128x128xf32>
    %c1_96 = arith.constant 1 : index
    %c0_97 = arith.constant 0 : index
    %c0_98 = arith.constant 0 : index
    %80 = vector.load %arg6[%c1_96, %c0_97, %c0_98] : memref<3x128x128xf32, #tpu.memory_space<vmem>>, vector<1x128x128xf32>
    %81 = vector.shape_cast %80 : vector<1x128x128xf32> to vector<128x128xf32>
    %c0_99 = arith.constant 0 : index
    %c1_100 = arith.constant 1 : index
    %82 = vector.load %arg13[%c0_99, %c1_100] : memref<128x131xf32, #tpu.memory_space<vmem>>, vector<128x128xf32>
    %cst_101 = arith.constant dense<0.000000e+00> : vector<128x128xf32>
    %83 = tpu.matmul %81, %82, %cst_101 {dimension_numbers = #tpu.dot_dimension_numbers<[1], [0], [0], [1], [0, 0, 1, 1], [], []>} : vector<128x128xf32>, vector<128x128xf32>, vector<128x128xf32> -> vector<128x128xf32>
    %84 = arith.addf %79, %83 : vector<128x128xf32>
    %c2_102 = arith.constant 2 : index
    %c0_103 = arith.constant 0 : index
    %c0_104 = arith.constant 0 : index
    %85 = vector.load %arg6[%c2_102, %c0_103, %c0_104] : memref<3x128x128xf32, #tpu.memory_space<vmem>>, vector<1x128x128xf32>
    %86 = vector.shape_cast %85 : vector<1x128x128xf32> to vector<128x128xf32>
    %c0_105 = arith.constant 0 : index
    %c2_106 = arith.constant 2 : index
    %87 = vector.load %arg13[%c0_105, %c2_106] : memref<128x131xf32, #tpu.memory_space<vmem>>, vector<128x128xf32>
    %cst_107 = arith.constant dense<0.000000e+00> : vector<128x128xf32>
    %88 = tpu.matmul %86, %87, %cst_107 {dimension_numbers = #tpu.dot_dimension_numbers<[1], [0], [0], [1], [0, 0, 1, 1], [], []>} : vector<128x128xf32>, vector<128x128xf32>, vector<128x128xf32> -> vector<128x128xf32>
    %89 = arith.addf %84, %88 : vector<128x128xf32>
    %c0_108 = arith.constant 0 : index
    %c0_109 = arith.constant 0 : index
    %90 = vector.load %arg7[%c0_108, %c0_109] : memref<128x1xf32, #tpu.memory_space<vmem>>, vector<128x1xf32>
    %91 = vector.broadcast %90 : vector<128x1xf32> to vector<128x128xf32>
    %92 = arith.addf %89, %91 : vector<128x128xf32>
    %cst_110 = arith.constant 0.000000e+00 : f32
    %93 = vector.broadcast %cst_110 : f32 to vector<128x128xf32>
    %94 = arith.maximumf %92, %93 : vector<128x128xf32>
    %c0_111 = arith.constant 0 : index
    %c0_112 = arith.constant 0 : index
    %c0_113 = arith.constant 0 : index
    %95 = vector.load %arg8[%c0_111, %c0_112, %c0_113] : memref<2x128x128xf32, #tpu.memory_space<vmem>>, vector<1x128x128xf32>
    %96 = vector.shape_cast %95 : vector<1x128x128xf32> to vector<128x128xf32>
    %97 = arith.mulf %94, %96 : vector<128x128xf32>
    %cst_114 = arith.constant dense<0.000000e+00> : vector<128xf32>
    %98 = vector.multi_reduction <add>, %97, %cst_114 [0] : vector<128x128xf32> to vector<128xf32>
    %99 = vector.shape_cast %98 : vector<128xf32> to vector<1x128xf32>
    %c1_115 = arith.constant 1 : index
    %c0_116 = arith.constant 0 : index
    %c0_117 = arith.constant 0 : index
    %100 = vector.load %arg8[%c1_115, %c0_116, %c0_117] : memref<2x128x128xf32, #tpu.memory_space<vmem>>, vector<1x128x128xf32>
    %101 = vector.shape_cast %100 : vector<1x128x128xf32> to vector<128x128xf32>
    %102 = arith.mulf %94, %101 : vector<128x128xf32>
    %cst_118 = arith.constant dense<0.000000e+00> : vector<128xf32>
    %103 = vector.multi_reduction <add>, %102, %cst_118 [0] : vector<128x128xf32> to vector<128xf32>
    %104 = vector.shape_cast %103 : vector<128xf32> to vector<1x128xf32>
    %105 = tpu.concatenate %99, %104 in 0 : vector<1x128xf32>, vector<1x128xf32> -> vector<2x128xf32>
    %c0_119 = arith.constant 0 : index
    %c0_120 = arith.constant 0 : index
    %106 = vector.load %arg10[%c0_119, %c0_120] : memref<128x8xf32, #tpu.memory_space<vmem>>, vector<128x8xf32>
    %cst_121 = arith.constant dense<0.000000e+00> : vector<2x8xf32>
    %107 = tpu.matmul %105, %106, %cst_121 {dimension_numbers = #tpu.dot_dimension_numbers<[1], [0], [0], [1], [0, 0, 1, 1], [], []>} : vector<2x128xf32>, vector<128x8xf32>, vector<2x8xf32> -> vector<2x8xf32>
    %c0_122 = arith.constant 0 : index
    %c0_123 = arith.constant 0 : index
    %108 = vector.load %arg9[%c0_122, %c0_123] : memref<2x1xf32, #tpu.memory_space<vmem>>, vector<2x1xf32>
    %109 = vector.broadcast %108 : vector<2x1xf32> to vector<2x8xf32>
    %110 = arith.addf %107, %109 : vector<2x8xf32>
    %c0_124 = arith.constant 0 : index
    %c0_125 = arith.constant 0 : index
    %c0_126 = arith.constant 0 : index
    %111 = vector.load %arg11[%c0_124, %c0_125, %c0_126] : memref<1x2x8xf32, #tpu.memory_space<vmem>>, vector<1x2x8xf32>
    %112 = vector.shape_cast %111 : vector<1x2x8xf32> to vector<2x8xf32>
    %113 = vector.shape_cast %110 : vector<2x8xf32> to vector<1x2x8xf32>
    tpu.vector_store %arg11[%c0_124, %c0_125, %c0_126], %113 {strides = array<i32>} : memref<1x2x8xf32, #tpu.memory_space<vmem>>, vector<1x2x8xf32>,
    return
  }
  func.func @transform_0(%arg0: i32) -> (i32, i32, i32, i32) {
    %c0_i32 = arith.constant 0 : i32
    %c0_i32_0 = arith.constant 0 : i32
    %c0_i32_1 = arith.constant 0 : i32
    %c0_i32_2 = arith.constant 0 : i32
    return %arg0, %c0_i32, %c0_i32_0, %c0_i32_1 : i32, i32, i32, i32
  }
  func.func @transform_1(%arg0: i32) -> (i32, i32) {
    %c0_i32 = arith.constant 0 : i32
    %c0_i32_0 = arith.constant 0 : i32
    %c0_i32_1 = arith.constant 0 : i32
    return %c0_i32, %c0_i32_0 : i32, i32
  }
  func.func @transform_2(%arg0: i32) -> (i32, i32) {
    %c0_i32 = arith.constant 0 : i32
    %c0_i32_0 = arith.constant 0 : i32
    %c0_i32_1 = arith.constant 0 : i32
    return %c0_i32, %c0_i32_0 : i32, i32
  }
  func.func @transform_3(%arg0: i32) -> (i32, i32, i32) {
    %c0_i32 = arith.constant 0 : i32
    %c0_i32_0 = arith.constant 0 : i32
    %c0_i32_1 = arith.constant 0 : i32
    %c0_i32_2 = arith.constant 0 : i32
    return %c0_i32, %c0_i32_0, %c0_i32_1 : i32, i32, i32
  }
  func.func @transform_4(%arg0: i32) -> (i32, i32) {
    %c0_i32 = arith.constant 0 : i32
    %c0_i32_0 = arith.constant 0 : i32
    %c0_i32_1 = arith.constant 0 : i32
    return %c0_i32, %c0_i32_0 : i32, i32
  }
  func.func @transform_5(%arg0: i32) -> (i32, i32, i32) {
    %c0_i32 = arith.constant 0 : i32
    %c0_i32_0 = arith.constant 0 : i32
    %c0_i32_1 = arith.constant 0 : i32
    %c0_i32_2 = arith.constant 0 : i32
    return %c0_i32, %c0_i32_0, %c0_i32_1 : i32, i32, i32
  }
  func.func @transform_6(%arg0: i32) -> (i32, i32) {
    %c0_i32 = arith.constant 0 : i32
    %c0_i32_0 = arith.constant 0 : i32
    %c0_i32_1 = arith.constant 0 : i32
    return %c0_i32, %c0_i32_0 : i32, i32
  }
  func.func @transform_7(%arg0: i32) -> (i32, i32, i32) {
    %c0_i32 = arith.constant 0 : i32
    %c0_i32_0 = arith.constant 0 : i32
    %c0_i32_1 = arith.constant 0 : i32
    %c0_i32_2 = arith.constant 0 : i32
    return %c0_i32, %c0_i32_0, %c0_i32_1 : i32, i32, i32
  }
  func.func @transform_8(%arg0: i32) -> (i32, i32) {
    %c0_i32 = arith.constant 0 : i32
    %c0_i32_0 = arith.constant 0 : i32
    %c0_i32_1 = arith.constant 0 : i32
    return %c0_i32, %c0_i32_0 : i32, i32
  }
  func.func @transform_9(%arg0: i32) -> (i32, i32) {
    %c0_i32 = arith.constant 0 : i32
    %c0_i32_0 = arith.constant 0 : i32
    %c0_i32_1 = arith.constant 0 : i32
    return %c0_i32, %c0_i32_0 : i32, i32
  }
  func.func @transform_10(%arg0: i32) -> (i32, i32, i32) {
    %c0_i32 = arith.constant 0 : i32
    %c0_i32_0 = arith.constant 0 : i32
    %c0_i32_1 = arith.constant 0 : i32
    return %arg0, %c0_i32, %c0_i32_0 : i32, i32, i32
  }
}

</mosaic_0001>

<bundles_post_ra>
// kernel: model_forward.1
= control target key start
LH: loop header
LB: loop body
LE: loop exit
PB: predicated region body
PF: predicated region fallthrough
CT: control target
= control target key end

     0   :  { %s3380_s13 = smov 0   ;;  %s4517_s0 = inlined_call_operand.vmem [shape: f32[2,3,8,131], index: 0, kind: input, shape index: {}]   ;;  %s4518_s1 = inlined_call_operand.vmem [shape: f32[8,24], index: 1, kind: input, shape index: {}]   ;;  %s4519_s2 = inlined_call_operand.vmem [shape: f32[8,1], index: 2, kind: input, shape index: {}]   ;;  %s4520_s3 = inlined_call_operand.vmem [shape: f32[3,128,24], index: 3, kind: input, shape index: {}]   ;;  %s4521_s4 = inlined_call_operand.vmem [shape: f32[128,1], index: 4, kind: input, shape index: {}]   ;;  %s4522_s5 = inlined_call_operand.vmem [shape: f32[3,128,128], index: 5, kind: input, shape index: {}]   ;;  %s4523_s6 = inlined_call_operand.vmem [shape: f32[128,1], index: 6, kind: input, shape index: {}]   ;;  %s4524_s7 = inlined_call_operand.vmem [shape: f32[2,128,128], index: 7, kind: input, shape index: {}]   ;;  %s4525_s8 = inlined_call_operand.vmem [shape: f32[2,1], index: 8, kind: input, shape index: {}]   ;;  %s4526_s9 = inlined_call_operand.vmem [shape: f32[128,8], index: 9, kind: input, shape index: {}]   ;;  %s4527_s10 = inlined_call_operand.vmem [shape: f32[2,2,8], index: 10, kind: output, shape index: {}]  }
   0x1 LB: > { %s2650_s14 = sadd.s32 4294967295, %s3318_s13   ;;  %p2654_p0 = scmp.ge.s32.totalorder %s3318_s13, 1  ;;  %s3318_s13 = sphi %s3380_s13, %s20_s13  }
   0x2   : > { %p312_p1 = scmp.lt.s32.totalorder %s3318_s13, 3 }
   0x4   : > { %p313_p2 = pnand %p2654_p0, %p312_p1 }
   0x5   : > { %p349_p3 = scmp.lt.s32.totalorder (!%p313_p2), %s2650_s14, 1  ;;  %s3323_s19 = smov (!%p313_p2), 127  }
   0x6   : > { %316 = sbr.rel (%p313_p2) target bundleno = 1701 (0x6a5), region = 60  ;;  %s3324_s20 = smov (!%p313_p2), 126  }
   0xb   : > { %v3320_v0 = vmov 0.0   ;;  %s4529_s14 = smov (!%p349_p3, %s2650_s14), 1  ;;  %vm3321_vm0 = vmmov 0   ;;  %v3322_v1 = vmov 0   ;;  %v394_v4 = vld [vmem:[%s4519_s2] sm:$0xff]  ;;  %vm410_vm1 = vcmask 1031168  }
   0xc   : > { %2976 = vmatprep.subr.mxu0 %v3320_v0  ;;  %s3296_s15 = smul.u32 48, %s4529_s14  ;;  %2982 = vmatprep.mubr.msk.f32.mxu0 %vm3321_vm0, %v3320_v0  ;;  %vm403_vm2 = vcmask 1039360   ;;  %v3414_v11 = vld [vmem:[%s4518_s1] sm:$0xff]  ;;  %vm418_vm3 = vcmask 195584   ;;  %vm359_vm4 = vcmask 23552   ;;  %v511_v30 = vld [vmem:[%s4520_s3 + $0x8] sm:$0xff] }
   0xd   : > { %3310 = vset.pattern.permute.xlu0 %v3322_v1  ;;  %3311 = vset.pattern.permute.xlu1 %v3322_v1  ;;  %360 = vst.msk [vmem:[#allocation2 + $0x8] sm:$0xff] %vm359_vm4, %v3320_v0  ;;  %362 = vst.msk [vmem:[#allocation3 + $0x8] sm:$0xff] %vm359_vm4, %v3320_v0  ;;  %v510_v14 = vld [vmem:[%s4520_s3] sm:$0xff]  ;;  %v512_v33 = vld [vmem:[%s4520_s3 + $0x10] sm:$0xff]  ;;  %vm2501_vm5 = vcmask 1040384   ;;  %s2656_s21 = sshll.u32 %s4529_s14, 1 }
   0xe   : > { %s3397_s18 = scalar_lea.vmem %s4517_s0, %s3296_s15  ;;  %364 = vst.msk [vmem:[#allocation3 + $0x18] sm:$0xff] %vm359_vm4, %v3320_v0  ;;  %366 = vst.msk [vmem:[#allocation3 + $0x28] sm:$0xff] %vm359_vm4, %v3320_v0  ;;  %3030 = vmatprep.mubr.msk.f32.mxu1 %vm418_vm3, %v510_v14  ;;  %v513_v35 = vld [vmem:[%s4520_s3 + $0x18] sm:$0xff]  ;;  %v514_v38 = vld [vmem:[%s4520_s3 + $0x20] sm:$0xff]  ;;  %s357_s24 = scalar_lea.vmem %s4527_s10, %s2656_s21  ;;  %vm2595_vm6 = vcmask 58368  }
   0xf   : > { %v395_v2 = vld [vmem:[%s3397_s18] sm:$0xff]  ;;  %v396_v3 = vld [vmem:[%s3397_s18 + $0x8] sm:$0xff]  ;;  %368 = vst.msk [vmem:[#allocation3 + $0x38] sm:$0xff] %vm359_vm4, %v3320_v0  ;;  %370 = vst.msk [vmem:[#allocation3 + $0x48] sm:$0xff] %vm359_vm4, %v3320_v0 }
  0x10   : > { %399 = vrot.lane.b32.xlu1 %v395_v2, %s3323_s19  ;;  %406 = vrot.lane.b32.xlu0 %v395_v2, %s3324_s20  ;;  %372 = vst.msk [vmem:[#allocation3 + $0x58] sm:$0xff] %vm359_vm4, %v3320_v0  ;;  %374 = vst.msk [vmem:[#allocation3 + $0x68] sm:$0xff] %vm359_vm4, %v3320_v0  ;;  %v2658_v19 = vld [vmem:[%s3397_s18 + $0x10] sm:$0xff]  ;;  %v2659_v20 = vld [vmem:[%s3397_s18 + $0x18] sm:$0xff] }
  0x11   : > { %376 = vst.msk [vmem:[#allocation3 + $0x78] sm:$0xff] %vm359_vm4, %v3320_v0  ;;  %378 = vst.msk [vmem:[#allocation3 + $0x88] sm:$0xff] %vm359_vm4, %v3320_v0  ;;  %v3473_v21 = vld [vmem:[%s3397_s18 + $0x20] sm:$0xff]  ;;  %v2710_v22 = vld [vmem:[%s3397_s18 + $0x28] sm:$0xff] }
  0x12   : > { %380 = vst.msk [vmem:[#allocation3 + $0x98] sm:$0xff] %vm359_vm4, %v3320_v0  ;;  %382 = vst.msk [vmem:[#allocation3 + $0xa8] sm:$0xff] %vm359_vm4, %v3320_v0  ;;  %v515_v40 = vld [vmem:[%s4520_s3 + $0x28] sm:$0xff]  ;;  %v516_v42 = vld [vmem:[%s4520_s3 + $0x30] sm:$0xff] }
  0x13   : > { %384 = vst.msk [vmem:[#allocation3 + $0xb8] sm:$0xff] %vm359_vm4, %v3320_v0  ;;  %386 = vst.msk [vmem:[#allocation3 + $0xc8] sm:$0xff] %vm359_vm4, %v3320_v0  ;;  %v517_v45 = vld [vmem:[%s4520_s3 + $0x38] sm:$0xff]  ;;  %v518_v46 = vld [vmem:[%s4520_s3 + $0x40] sm:$0xff] }
  0x14   : > { %401 = vrot.lane.b32.xlu1 %v396_v3, %s3323_s19  ;;  %408 = vrot.lane.b32.xlu0 %v396_v3, %s3324_s20  ;;  %388 = vst.msk [vmem:[#allocation3 + $0xd8] sm:$0xff] %vm359_vm4, %v3320_v0  ;;  %390 = vst.msk [vmem:[#allocation3 + $0xe8] sm:$0xff] %vm359_vm4, %v3320_v0  ;;  %v495_v12 = vld [vmem:[#allocation2 + $0x8] sm:$0xff]  ;;  %v520_v50 = vld [vmem:[%s4520_s3 + $0x50] sm:$0xff] }
  0x15   : > { %392 = vst.msk [vmem:[#allocation3 + $0xf8] sm:$0xff] %vm359_vm4, %v3320_v0  ;;  %v519_v49 = vld [vmem:[%s4520_s3 + $0x48] sm:$0xff]  ;;  %v521_v51 = vld [vmem:[%s4520_s3 + $0x58] sm:$0xff]  ;;  %v522_v52 = vld [vmem:[%s4520_s3 + $0x60] sm:$0xff] }
  0x16   : > { %v523_v53 = vld [vmem:[%s4520_s3 + $0x68] sm:$0xff]  ;;  %v524_v54 = vld [vmem:[%s4520_s3 + $0x70] sm:$0xff]  ;;  %v525_v55 = vld [vmem:[%s4520_s3 + $0x78] sm:$0xff] }
  0x17   : > { %v1379_v56 = vld [vmem:[%s4521_s4 + $0x70] sm:$0xff]  ;;  %v1377_v57 = vld [vmem:[%s4521_s4 + $0x60] sm:$0xff]  ;;  %v1561_v14 = vld [vmem:[#allocation3 + $0x38] sm:$0xff] }
  0x18   : > { %415 = vperm.xlu0 %3310, %v394_v4   ;;  %506 = vrot.lane.b32.xlu1 %v495_v12, %s3324_s20  ;;  %v1375_v58 = vld [vmem:[%s4521_s4 + $0x50] sm:$0xff]  ;;  %v1373_v59 = vld [vmem:[%s4521_s4 + $0x40] sm:$0xff] }
  0x19   : > { %v1371_v60 = vld [vmem:[%s4521_s4 + $0x30] sm:$0xff]  ;;  %v1369_v61 = vld [vmem:[%s4521_s4 + $0x20] sm:$0xff] }
  0x1a   : > { %v1367_v62 = vld [vmem:[%s4521_s4 + $0x10] sm:$0xff]  ;;  %v1365_v63 = vld [vmem:[%s4521_s4] sm:$0xff]  ;;  %v1570_v4 = vld [vmem:[#allocation3 + $0xc8] sm:$0xff] }
  0x1b   : > { %v1571_v3 = vld [vmem:[#allocation3 + $0xd8] sm:$0xff] }
  0x1c   : > { %v1573_v1 = vld [vmem:[#allocation3 + $0xf8] sm:$0xff] }
  0x82   : > { %v400_v5 = vpop.permute.xlu1 %399  ;;  %v407_v6 = vpop.permute.xlu0 %406 }
  0x86   : > { %v402_v7 = vpop.permute.xlu1 %401  ;;  %v409_v8 = vpop.permute.xlu0 %408 }
  0x87   : > { %v411_v9 = vsel %vm410_vm1, %v407_v6, %v409_v8  ;;  %v404_v10 = vsel %vm403_vm2, %v400_v5, %v402_v7  ;;  %v1569_v5 = vld [vmem:[#allocation3 + $0xb8] sm:$0xff]  ;;  %v1568_v6 = vld [vmem:[#allocation3 + $0xa8] sm:$0xff] }
  0x88   : > { %2977 = vmatpush3.msra.mxu0 %v411_v9  ;;  %v1567_v7 = vld [vmem:[#allocation3 + $0x98] sm:$0xff]  ;;  %v1566_v8 = vld [vmem:[#allocation3 + $0x88] sm:$0xff] }
  0x89   : > { %2978 = vmatprep.subr.mxu0 %v3320_v0  ;;  %v1565_v9 = vld [vmem:[#allocation3 + $0x78] sm:$0xff] }
  0x8a   : > { %2979 = vmatpush3.msra.mxu0 %v404_v10  ;;  %v507_v23 = vpop.permute.xlu1 %506  ;;  %v1564_v10 = vld [vmem:[#allocation3 + $0x68] sm:$0xff] }
  0x8b   : > { %2980 = vmatprep.subr.mxu0 %v3320_v0 }
  0x8c   : > { %2981 = vmatpush3.msra.mxu0 %v395_v2  ;;  %v1572_v2 = vld [vmem:[#allocation3 + $0xe8] sm:$0xff] }
  0x8d   : > { %2983 = vmatmul.mubr.msk.f32.vlgmr.msra.gmra.mxu0 %vm418_vm3, %v3414_v11  ;;  %2985 = vmatprep.subr.mxu0 %v3320_v0 }
  0x8e   : > { %2991 = vmatprep.mubr.msk.f32.mxu0 %vm3321_vm0, %v3320_v0 }
  0x93   : > { %v3457_v13 = vpop.permute.xlu0 %415 }
 0x14d   : > { %v488_v15 = vpop.f32.mrf.mxu0 }
 0x14e   : > { %v489_v16 = vadd.f32 %v488_v15, %v3457_v13  ;;  %v1560_v15 = vld [vmem:[#allocation3 + $0x28] sm:$0xff] }
 0x14f   : > { %v2984_v17 = vpop.f32.mrf.mxu0 }
 0x150   : > { %v492_v18 = vmax.f32 %v489_v16, 0.0  ;;  %v1559_v16 = vld [vmem:[#allocation3 + $0x18] sm:$0xff]  ;;  %v1558_v17 = vld [vmem:[#allocation3 + $0x8] sm:$0xff] }
 0x152   : > { %498 = vrot.lane.b32.xlu0 %v492_v18, %s3323_s19  ;;  %504 = vrot.lane.b32.xlu1 %v492_v18, %s3324_s20 }
 0x156   : > { %500 = vrot.lane.b32.xlu1 %v495_v12, %s3323_s19  ;;  %537 = vrot.lane.b32.xlu0 %v2658_v19, %s3324_s20 }
 0x15a   : > { %539 = vrot.lane.b32.xlu1 %v2659_v20, %s3324_s20  ;;  %531 = vrot.lane.b32.xlu0 %v2658_v19, %s3323_s19 }
 0x15e   : > { %533 = vrot.lane.b32.xlu1 %v2659_v20, %s3323_s19  ;;  %1045 = vrot.lane.b32.xlu0 %v3473_v21, %s3324_s20 }
 0x162   : > { %1047 = vrot.lane.b32.xlu1 %v2710_v22, %s3324_s20  ;;  %1039 = vrot.lane.b32.xlu0 %v3473_v21, %s3323_s19 }
 0x166   : > { %1041 = vrot.lane.b32.xlu1 %v2710_v22, %s3323_s19  ;;  %v2661_v22 = vld [vmem:[%s4520_s3 + $0x80] sm:$0xff] }
 0x16a   : > { %627 = vrot.lane.b32.xlu1 %v495_v12, %s3324_s20 }
 0x16e   : > { %621 = vrot.lane.b32.xlu1 %v495_v12, %s3323_s19 }
 0x172   : > { %1135 = vrot.lane.b32.xlu1 %v495_v12, %s3324_s20 }
 0x176   : > { %1129 = vrot.lane.b32.xlu1 %v495_v12, %s3323_s19  ;;  %v1562_v12 = vld [vmem:[#allocation3 + $0x48] sm:$0xff] }
 0x17a   : > { %1453 = vperm.xlu1 %3311, %v1379_v56   ;;  %v2277_v56 = vld [vmem:[%s4523_s6 + $0x58] sm:$0xff] }
 0x17e   : > { %1443 = vperm.xlu1 %3311, %v1377_v57   ;;  %v1366_v57 = vld [vmem:[%s4521_s4 + $0x8] sm:$0xff] }
 0x182   : > { %1433 = vperm.xlu1 %3311, %v1375_v58   ;;  %v2279_v58 = vld [vmem:[%s4523_s6 + $0x68] sm:$0xff] }
 0x186   : > { %1423 = vperm.xlu1 %3311, %v1373_v59  }
 0x18a   : > { %1413 = vperm.xlu1 %3311, %v1371_v60   ;;  %v2281_v60 = vld [vmem:[%s4523_s6 + $0x78] sm:$0xff] }
 0x18e   : > { %1403 = vperm.xlu1 %3311, %v1369_v61  }
 0x192   : > { %1393 = vperm.xlu1 %3311, %v1367_v62  }
 0x196   : > { %1383 = vperm.xlu1 %3311, %v1365_v63  }
 0x19a   : > { %1668 = vrot.lane.b32.xlu1 %v1573_v1, %s3323_s19 }
 0x19e   : > { %1664 = vrot.lane.b32.xlu1 %v1572_v2, %s3323_s19 }
 0x1a2   : > { %1660 = vrot.lane.b32.xlu1 %v1571_v3, %s3323_s19 }
 0x1a6   : > { %1656 = vrot.lane.b32.xlu1 %v1570_v4, %s3323_s19 }
 0x1aa   : > { %1652 = vrot.lane.b32.xlu1 %v1569_v5, %s3323_s19 }
 0x1ae   : > { %1648 = vrot.lane.b32.xlu1 %v1568_v6, %s3323_s19 }
 0x1b2   : > { %1644 = vrot.lane.b32.xlu1 %v1567_v7, %s3323_s19 }
 0x1b6   : > { %1640 = vrot.lane.b32.xlu1 %v1566_v8, %s3323_s19 }
 0x1ba   : > { %1636 = vrot.lane.b32.xlu1 %v1565_v9, %s3323_s19 }
 0x1be   : > { %1632 = vrot.lane.b32.xlu1 %v1564_v10, %s3323_s19 }
 0x1c4   : > { %v499_v24 = vpop.permute.xlu0 %498  ;;  %v505_v25 = vpop.permute.xlu1 %504 }
 0x1c5   : > { %v508_v26 = vsel %vm410_vm1, %v505_v25, %v507_v23 }
 0x1c6   : > { %3024 = vmatprep.subr.mxu1 %v508_v26 }
 0x1c7   : > { %3025 = vmatpush3.msra.mxu1 %v508_v26 }
 0x1c8   : > { %v501_v27 = vpop.permute.xlu1 %500  ;;  %v538_v28 = vpop.permute.xlu0 %537 }
 0x1c9   : > { %v502_v29 = vsel %vm403_vm2, %v499_v24, %v501_v27 }
 0x1ca   : > { %3026 = vmatprep.subr.mxu1 %v502_v29 }
 0x1cb   : > { %3027 = vmatpush3.msra.mxu1 %v502_v29 }
 0x1cc   : > { %3028 = vmatprep.subr.mxu1 %v492_v18  ;;  %v540_v31 = vpop.permute.xlu1 %539  ;;  %v532_v32 = vpop.permute.xlu0 %531 }
 0x1cd   : > { %v541_v34 = vsel %vm410_vm1, %v538_v28, %v540_v31  ;;  %3029 = vmatpush3.msra.mxu1 %v492_v18 }
 0x1ce   : > { %2986 = vmatpush3.msra.mxu0 %v541_v34  ;;  %3031 = vmatmul.mubr.msk.f32.vlgmr.msra.gmra.mxu1 %vm418_vm3, %v511_v30 }
 0x1cf   : > { %2987 = vmatprep.subr.mxu0 %v3320_v0  ;;  %3033 = vmatprep.mubr.msk.f32.mxu1 %vm418_vm3, %v512_v33 }
 0x1d0   : > { %v534_v36 = vpop.permute.xlu1 %533  ;;  %v1046_v37 = vpop.permute.xlu0 %1045  ;;  %3054 = vmatprep.subr.mxu1 %v3320_v0 }
 0x1d1   : > { %v535_v39 = vsel %vm403_vm2, %v532_v32, %v534_v36 }
 0x1d2   : > { %2988 = vmatpush3.msra.mxu0 %v535_v39  ;;  %3034 = vmatmul.mubr.msk.f32.gmra.mxu1 %vm418_vm3, %v513_v35  ;;  %v2712_v39 = vld [vmem:[%s4520_s3 + $0x100] sm:$0xff] }
 0x1d3   : > { %2989 = vmatprep.subr.mxu0 %v3320_v0  ;;  %3036 = vmatprep.mubr.msk.f32.mxu1 %vm418_vm3, %v514_v38 }
 0x1d4   : > { %2990 = vmatpush3.msra.mxu0 %v2658_v19  ;;  %v1048_v41 = vpop.permute.xlu1 %1047  ;;  %v1040_v44 = vpop.permute.xlu0 %1039 }
 0x1d5   : > { %v1049_v43 = vsel %vm410_vm1, %v1046_v37, %v1048_v41  ;;  %2992 = vmatmul.mubr.msk.f32.vlgmr.msra.gmra.mxu0 %vm418_vm3, %v3414_v11 }
 0x1d6   : > { %3037 = vmatmul.mubr.msk.f32.gmra.mxu1 %vm418_vm3, %v515_v40  ;;  %3000 = vmatprep.mubr.msk.f32.mxu0 %vm418_vm3, %v2661_v22 }
 0x1d7   : > { %3055 = vmatpush3.msra.mxu1 %v1049_v43  ;;  %3039 = vmatprep.mubr.msk.f32.mxu1 %vm418_vm3, %v516_v42 }
 0x1d8   : > { %v1042_v47 = vpop.permute.xlu1 %1041  ;;  %3056 = vmatprep.subr.mxu1 %v3320_v0 }
 0x1d9   : > { %v1043_v48 = vsel %vm403_vm2, %v1040_v44, %v1042_v47  ;;  %v1380_v44 = vld [vmem:[%s4521_s4 + $0x78] sm:$0xff]  ;;  %v1374_v47 = vld [vmem:[%s4521_s4 + $0x48] sm:$0xff] }
 0x1da   : > { %3040 = vmatmul.mubr.msk.f32.gmra.mxu1 %vm418_vm3, %v517_v45  ;;  %v1376_v45 = vld [vmem:[%s4521_s4 + $0x58] sm:$0xff] }
 0x1db   : > { %3042 = vmatprep.mubr.msk.f32.mxu1 %vm418_vm3, %v518_v46  ;;  %3057 = vmatpush3.msra.mxu1 %v1043_v48  ;;  %v2267_v46 = vld [vmem:[%s4523_s6 + $0x8] sm:$0xff]  ;;  %v2269_v48 = vld [vmem:[%s4523_s6 + $0x18] sm:$0xff] }
 0x1dc   : > { %3058 = vmatprep.subr.mxu1 %v3320_v0 }
 0x1dd   : > { %3059 = vmatpush3.msra.mxu1 %v3473_v21 }
 0x1de   : > { %3043 = vmatmul.mubr.msk.f32.gmra.mxu1 %vm418_vm3, %v519_v49  ;;  %v1372_v49 = vld [vmem:[%s4521_s4 + $0x38] sm:$0xff] }
 0x1df   : > { %3045 = vmatprep.mubr.msk.f32.mxu1 %vm418_vm3, %v520_v50  ;;  %v2271_v50 = vld [vmem:[%s4523_s6 + $0x28] sm:$0xff] }
 0x1e2   : > { %3046 = vmatmul.mubr.msk.f32.gmra.mxu1 %vm418_vm3, %v521_v51  ;;  %v1370_v51 = vld [vmem:[%s4521_s4 + $0x28] sm:$0xff] }
 0x1e3   : > { %3048 = vmatprep.mubr.msk.f32.mxu1 %vm418_vm3, %v522_v52  ;;  %v2273_v52 = vld [vmem:[%s4523_s6 + $0x38] sm:$0xff] }
 0x1e6   : > { %3049 = vmatmul.mubr.msk.f32.gmra.mxu1 %vm418_vm3, %v523_v53  ;;  %v1368_v53 = vld [vmem:[%s4521_s4 + $0x18] sm:$0xff] }
 0x1e7   : > { %3051 = vmatprep.mubr.msk.f32.mxu1 %vm418_vm3, %v524_v54  ;;  %v2275_v54 = vld [vmem:[%s4523_s6 + $0x48] sm:$0xff] }
 0x1ea   : > { %3052 = vmatmul.mubr.msk.f32.gmra.mxu1 %vm418_vm3, %v525_v55  ;;  %v628_v55 = vpop.permute.xlu1 %627 }
 0x1eb   : > { %3060 = vmatprep.mubr.msk.f32.mxu1 %vm3321_vm0, %v3320_v0 }
 0x1ee   : > { %3061 = vmatmul.mubr.msk.f32.vlgmr.msra.gmra.mxu1 %vm418_vm3, %v3414_v11  ;;  %v1563_v11 = vld [vmem:[#allocation3 + $0x58] sm:$0xff]  ;;  %v622_v59 = vpop.permute.xlu1 %621 }
 0x1ef   : > { %1628 = vrot.lane.b32.xlu1 %v1563_v11, %s3323_s19  ;;  %3069 = vmatprep.mubr.msk.f32.mxu1 %vm418_vm3, %v2712_v39  ;;  %v2675_v39 = vld [vmem:[%s4520_s3 + $0xf0] sm:$0xff] }
 0x1f2   : > { %v1136_v61 = vpop.permute.xlu1 %1135 }
 0x1f3   : > { %1624 = vrot.lane.b32.xlu1 %v1562_v12, %s3323_s19 }
 0x1f6   : > { %v1130_v22 = vpop.permute.xlu1 %1129 }
 0x1f7   : > { %1620 = vrot.lane.b32.xlu1 %v1561_v14, %s3323_s19 }
 0x1fb   : > { %1616 = vrot.lane.b32.xlu1 %v1560_v15, %s3323_s19 }
 0x1ff   : > { %1612 = vrot.lane.b32.xlu1 %v1559_v16, %s3323_s19 }
 0x203   : > { %1608 = vrot.lane.b32.xlu1 %v1558_v17, %s3323_s19 }
 0x207   : > { %2071 = vrot.lane.b32.xlu1 %v1573_v1, %s3324_s20 }
 0x20b   : > { %2067 = vrot.lane.b32.xlu1 %v1572_v2, %s3324_s20 }
 0x20f   : > { %2063 = vrot.lane.b32.xlu1 %v1571_v3, %s3324_s20  ;;  %v2662_v3 = vld [vmem:[%s4520_s3 + $0x88] sm:$0xff] }
 0x213   : > { %2059 = vrot.lane.b32.xlu1 %v1570_v4, %s3324_s20  ;;  %v2663_v4 = vld [vmem:[%s4520_s3 + $0x90] sm:$0xff] }
 0x217   : > { %2055 = vrot.lane.b32.xlu1 %v1569_v5, %s3324_s20  ;;  %v2664_v5 = vld [vmem:[%s4520_s3 + $0x98] sm:$0xff] }
 0x21b   : > { %2051 = vrot.lane.b32.xlu1 %v1568_v6, %s3324_s20  ;;  %v2665_v6 = vld [vmem:[%s4520_s3 + $0xa0] sm:$0xff] }
 0x21f   : > { %2047 = vrot.lane.b32.xlu1 %v1567_v7, %s3324_s20  ;;  %v2666_v7 = vld [vmem:[%s4520_s3 + $0xa8] sm:$0xff] }
 0x223   : > { %2043 = vrot.lane.b32.xlu1 %v1566_v8, %s3324_s20  ;;  %v2667_v8 = vld [vmem:[%s4520_s3 + $0xb0] sm:$0xff] }
 0x227   : > { %2039 = vrot.lane.b32.xlu1 %v1565_v9, %s3324_s20  ;;  %v2668_v9 = vld [vmem:[%s4520_s3 + $0xb8] sm:$0xff] }
 0x22b   : > { %2035 = vrot.lane.b32.xlu1 %v1564_v10, %s3324_s20  ;;  %v2669_v10 = vld [vmem:[%s4520_s3 + $0xc0] sm:$0xff] }
 0x22f   : > { %2031 = vrot.lane.b32.xlu1 %v1563_v11, %s3324_s20  ;;  %v2670_v11 = vld [vmem:[%s4520_s3 + $0xc8] sm:$0xff] }
 0x233   : > { %2027 = vrot.lane.b32.xlu1 %v1562_v12, %s3324_s20  ;;  %v2671_v12 = vld [vmem:[%s4520_s3 + $0xd0] sm:$0xff] }
 0x237   : > { %2023 = vrot.lane.b32.xlu1 %v1561_v14, %s3324_s20 }
 0x23b   : > { %2019 = vrot.lane.b32.xlu1 %v1560_v15, %s3324_s20 }
 0x23f   : > { %2015 = vrot.lane.b32.xlu1 %v1559_v16, %s3324_s20  ;;  %v2672_v16 = vld [vmem:[%s4520_s3 + $0xd8] sm:$0xff] }
 0x243   : > { %2011 = vrot.lane.b32.xlu1 %v1558_v17, %s3324_s20  ;;  %v2673_v17 = vld [vmem:[%s4520_s3 + $0xe0] sm:$0xff] }
 0x247   : > { %2289 = vperm.xlu1 %3311, %v2267_v46   ;;  %v2720_v46 = vld [vmem:[%s4520_s3 + $0x140] sm:$0xff] }
 0x24b   : > { %2299 = vperm.xlu1 %3311, %v2269_v48   ;;  %v2722_v48 = vld [vmem:[%s4520_s3 + $0x150] sm:$0xff] }
 0x24f   : > { %2309 = vperm.xlu1 %3311, %v2271_v50   ;;  %v2724_v50 = vld [vmem:[%s4520_s3 + $0x160] sm:$0xff] }
 0x253   : > { %2319 = vperm.xlu1 %3311, %v2273_v52   ;;  %v2726_v52 = vld [vmem:[%s4520_s3 + $0x170] sm:$0xff] }
 0x257   : > { %2329 = vperm.xlu1 %3311, %v2275_v54  }
 0x25b   : > { %2339 = vperm.xlu1 %3311, %v2277_v56  }
 0x25f   : > { %2349 = vperm.xlu1 %3311, %v2279_v58  }
 0x263   : > { %2359 = vperm.xlu1 %3311, %v2281_v60  }
 0x28e   : > { %v3608_v18 = vpop.f32.mrf.mxu1 }
 0x290   : > { %v3611_v19 = vpop.f32.mrf.mxu1 }
 0x292   : > { %v3613_v20 = vpop.f32.mrf.mxu1 }
 0x294   : > { %v3616_v21 = vpop.f32.mrf.mxu1 }
 0x295   : > { %v609_v23 = vpop.f32.mrf.mxu0 }
 0x296   : > { %v610_v24 = vadd.f32 %v609_v23, %v3457_v13  ;;  %v3623_v25 = vpop.f32.mrf.mxu1 }
 0x297   : > { %v2993_v26 = vpop.f32.mrf.mxu0 }
 0x298   : > { %v3626_v27 = vmax.f32 %v610_v24, 0.0  ;;  %v3628_v28 = vpop.f32.mrf.mxu1  ;;  %v2674_v26 = vld [vmem:[%s4520_s3 + $0xe8] sm:$0xff] }
 0x29a   : > { %v3630_v29 = vpop.f32.mrf.mxu1  ;;  %625 = vrot.lane.b32.xlu0 %v3626_v27, %s3324_s20 }
 0x29c   : > { %v3635_v30 = vpop.f32.mrf.mxu1 }
 0x29e   : > { %v3637_v31 = vpop.f32.mrf.mxu1  ;;  %619 = vrot.lane.b32.xlu0 %v3626_v27, %s3323_s19 }
 0x2a0   : > { %v3642_v32 = vpop.f32.mrf.mxu1 }
 0x2a2   : > { %v3644_v33 = vpop.f32.mrf.mxu1 }
 0x2a4   : > { %v3647_v34 = vpop.f32.mrf.mxu1 }
 0x2a6   : > { %v3649_v35 = vpop.f32.mrf.mxu1 }
 0x2a8   : > { %v3652_v36 = vpop.f32.mrf.mxu1 }
 0x2aa   : > { %v3654_v37 = vpop.f32.mrf.mxu1 }
 0x2ac   : > { %v3657_v38 = vpop.f32.mrf.mxu1 }
 0x2ae   : > { %v1117_v40 = vpop.f32.mrf.mxu1 }
 0x2af   : > { %v1118_v41 = vadd.f32 %v1117_v40, %v3457_v13  ;;  %v1378_v13 = vld [vmem:[%s4521_s4 + $0x68] sm:$0xff]  ;;  %v2714_v40 = vld [vmem:[%s4520_s3 + $0x110] sm:$0xff] }
 0x2b0   : > { %v3062_v42 = vpop.f32.mrf.mxu1 }
 0x2b1   : > { %v3665_v43 = vmax.f32 %v1118_v41, 0.0  ;;  %v2676_v41 = vld [vmem:[%s4520_s3 + $0xf8] sm:$0xff] }
 0x2b2   : > { %v2715_v42 = vld [vmem:[%s4520_s3 + $0x118] sm:$0xff] }
 0x2b3   : > { %1133 = vrot.lane.b32.xlu0 %v3665_v43, %s3324_s20 }
 0x2b7   : > { %1127 = vrot.lane.b32.xlu0 %v3665_v43, %s3323_s19 }
 0x2bb   : > { %1458 = vperm.xlu0 %3310, %v1380_v44   ;;  %v2716_v44 = vld [vmem:[%s4520_s3 + $0x120] sm:$0xff] }
 0x2bf   : > { %1448 = vperm.xlu0 %3310, %v1378_v13   ;;  %v2718_v13 = vld [vmem:[%s4520_s3 + $0x130] sm:$0xff] }
 0x2c3   : > { %1438 = vperm.xlu0 %3310, %v1376_v45   ;;  %v2719_v45 = vld [vmem:[%s4520_s3 + $0x138] sm:$0xff] }
 0x2c7   : > { %1428 = vperm.xlu0 %3310, %v1374_v47   ;;  %v2721_v47 = vld [vmem:[%s4520_s3 + $0x148] sm:$0xff] }
 0x2cb   : > { %1418 = vperm.xlu0 %3310, %v1372_v49   ;;  %v2723_v49 = vld [vmem:[%s4520_s3 + $0x158] sm:$0xff] }
 0x2cf   : > { %1408 = vperm.xlu0 %3310, %v1370_v51   ;;  %v2725_v51 = vld [vmem:[%s4520_s3 + $0x168] sm:$0xff] }
 0x2d3   : > { %1398 = vperm.xlu0 %3310, %v1368_v53   ;;  %v2727_v53 = vld [vmem:[%s4520_s3 + $0x178] sm:$0xff] }
 0x2d7   : > { %1388 = vperm.xlu0 %3310, %v1366_v57  }
 0x30c   : > { %v626_v62 = vpop.permute.xlu0 %625 }
 0x30d   : > { %v629_v63 = vsel %vm410_vm1, %v626_v62, %v628_v55  ;;  %v3853_v55 = vpop.permute.xlu1 %1453 }
 0x30e   : > { %2994 = vmatprep.subr.mxu0 %v629_v63 }
 0x30f   : > { %2995 = vmatpush3.msra.mxu0 %v629_v63 }
 0x310   : > { %v620_v1 = vpop.permute.xlu0 %619 }
 0x311   : > { %v623_v2 = vsel %vm403_vm2, %v620_v1, %v622_v59  ;;  %v3857_v57 = vpop.permute.xlu1 %1443 }
 0x312   : > { %2996 = vmatprep.subr.mxu0 %v623_v2 }
 0x313   : > { %2997 = vmatpush3.msra.mxu0 %v623_v2 }
 0x314   : > { %2998 = vmatprep.subr.mxu0 %v3626_v27 }
 0x315   : > { %2999 = vmatpush3.msra.mxu0 %v3626_v27  ;;  %v2713_v27 = vld [vmem:[%s4520_s3 + $0x108] sm:$0xff]  ;;  %v3861_v59 = vpop.permute.xlu1 %1433 }
 0x316   : > { %3001 = vmatmul.mubr.msk.f32.vlgmr.msra.gmra.mxu0 %vm418_vm3, %v2662_v3 }
 0x317   : > { %3003 = vmatprep.mubr.msk.f32.mxu0 %vm418_vm3, %v2663_v4 }
 0x319   : > { %v3865_v1 = vpop.permute.xlu1 %1423 }
 0x31a   : > { %3004 = vmatmul.mubr.msk.f32.gmra.mxu0 %vm418_vm3, %v2664_v5 }
 0x31b   : > { %3006 = vmatprep.mubr.msk.f32.mxu0 %vm418_vm3, %v2665_v6 }
 0x31d   : > { %v1414_v5 = vpop.permute.xlu1 %1413 }
 0x31e   : > { %3007 = vmatmul.mubr.msk.f32.gmra.mxu0 %vm418_vm3, %v2666_v7 }
 0x31f   : > { %3009 = vmatprep.mubr.msk.f32.mxu0 %vm418_vm3, %v2667_v8 }
 0x322   : > { %3010 = vmatmul.mubr.msk.f32.gmra.mxu0 %vm418_vm3, %v2668_v9  ;;  %v1404_v9 = vpop.permute.xlu1 %1403 }
 0x323   : > { %3012 = vmatprep.mubr.msk.f32.mxu0 %vm418_vm3, %v2669_v10 }
 0x325   : > { %v1134_v14 = vpop.permute.xlu0 %1133 }
 0x326   : > { %3013 = vmatmul.mubr.msk.f32.gmra.mxu0 %vm418_vm3, %v2670_v11  ;;  %v1137_v15 = vsel %vm410_vm1, %v1134_v14, %v1136_v61 }
 0x327   : > { %3063 = vmatprep.subr.mxu1 %v1137_v15  ;;  %3015 = vmatprep.mubr.msk.f32.mxu0 %vm418_vm3, %v2671_v12  ;;  %v1394_v12 = vpop.permute.xlu1 %1393 }
 0x328   : > { %3064 = vmatpush3.msra.mxu1 %v1137_v15 }
 0x329   : > { %v1128_v23 = vpop.permute.xlu0 %1127 }
 0x32a   : > { %3016 = vmatmul.mubr.msk.f32.gmra.mxu0 %vm418_vm3, %v2672_v16  ;;  %v1131_v24 = vsel %vm403_vm2, %v1128_v23, %v1130_v22 }
 0x32b   : > { %3065 = vmatprep.subr.mxu1 %v1131_v24  ;;  %3018 = vmatprep.mubr.msk.f32.mxu0 %vm418_vm3, %v2673_v17 }
 0x32c   : > { %3066 = vmatpush3.msra.mxu1 %v1131_v24 }
 0x32d   : > { %3067 = vmatprep.subr.mxu1 %v3665_v43 }
 0x32e   : > { %3019 = vmatmul.mubr.msk.f32.gmra.mxu0 %vm418_vm3, %v2674_v26  ;;  %3068 = vmatpush3.msra.mxu1 %v3665_v43  ;;  %v2717_v43 = vld [vmem:[%s4520_s3 + $0x128] sm:$0xff] }
 0x32f   : > { %3070 = vmatmul.mubr.msk.f32.vlgmr.msra.gmra.mxu1 %vm418_vm3, %v2713_v27  ;;  %3021 = vmatprep.mubr.msk.f32.mxu0 %vm418_vm3, %v2675_v39 }
 0x330   : > { %3072 = vmatprep.mubr.msk.f32.mxu1 %vm418_vm3, %v2714_v40 }
 0x332   : > { %3022 = vmatmul.mubr.msk.f32.gmra.mxu0 %vm418_vm3, %v2676_v41  ;;  %v1384_v41 = vpop.permute.xlu1 %1383 }
 0x333   : > { %3073 = vmatmul.mubr.msk.f32.gmra.mxu1 %vm418_vm3, %v2715_v42 }
 0x334   : > { %3075 = vmatprep.mubr.msk.f32.mxu1 %vm418_vm3, %v2716_v44 }
 0x336   : > { %v3851_v54 = vpop.permute.xlu0 %1458 }
 0x337   : > { %3076 = vmatmul.mubr.msk.f32.gmra.mxu1 %vm418_vm3, %v2717_v43 }
 0x338   : > { %3078 = vmatprep.mubr.msk.f32.mxu1 %vm418_vm3, %v2718_v13 }
 0x33a   : > { %v3855_v56 = vpop.permute.xlu0 %1448 }
 0x33b   : > { %3079 = vmatmul.mubr.msk.f32.gmra.mxu1 %vm418_vm3, %v2719_v45 }
 0x33c   : > { %3081 = vmatprep.mubr.msk.f32.mxu1 %vm418_vm3, %v2720_v46 }
 0x33e   : > { %v3859_v58 = vpop.permute.xlu0 %1438 }
 0x33f   : > { %3082 = vmatmul.mubr.msk.f32.gmra.mxu1 %vm418_vm3, %v2721_v47 }
 0x340   : > { %3084 = vmatprep.mubr.msk.f32.mxu1 %vm418_vm3, %v2722_v48 }
 0x342   : > { %v3863_v61 = vpop.permute.xlu0 %1428 }
 0x343   : > { %3085 = vmatmul.mubr.msk.f32.gmra.mxu1 %vm418_vm3, %v2723_v49 }
 0x344   : > { %3087 = vmatprep.mubr.msk.f32.mxu1 %vm418_vm3, %v2724_v50 }
 0x346   : > { %v1419_v3 = vpop.permute.xlu0 %1418 }
 0x347   : > { %3088 = vmatmul.mubr.msk.f32.gmra.mxu1 %vm418_vm3, %v2725_v51 }
 0x348   : > { %3090 = vmatprep.mubr.msk.f32.mxu1 %vm418_vm3, %v2726_v52 }
 0x34a   : > { %v1409_v7 = vpop.permute.xlu0 %1408 }
 0x34b   : > { %3091 = vmatmul.mubr.msk.f32.gmra.mxu1 %vm418_vm3, %v2727_v53 }
 0x34e   : > { %v1399_v11 = vpop.permute.xlu0 %1398 }
 0x352   : > { %v1389_v17 = vpop.permute.xlu0 %1388 }
 0x3d6   : > { %v3002_v60 = vpop.f32.mrf.mxu0 }
 0x3d7   : > { %v961_v15 = vadd.f32 %v3608_v18, %v3002_v60 }
 0x3d8   : > { %v762_v62 = vpop.f32.mrf.mxu0 }
 0x3d9   : > { %v956_v22 = vadd.f32 %v3611_v19, %v762_v62 }
 0x3da   : > { %v3005_v63 = vpop.f32.mrf.mxu0 }
 0x3db   : > { %v971_v27 = vadd.f32 %v3613_v20, %v3005_v63 }
 0x3dc   : > { %v772_v2 = vpop.f32.mrf.mxu0 }
 0x3dd   : > { %v966_v44 = vadd.f32 %v3616_v21, %v772_v2 }
 0x3de   : > { %v3008_v4 = vpop.f32.mrf.mxu0 }
 0x3df   : > { %v981_v47 = vadd.f32 %v3623_v25, %v3008_v4 }
 0x3e0   : > { %v782_v6 = vpop.f32.mrf.mxu0 }
 0x3e1   : > { %v976_v50 = vadd.f32 %v3628_v28, %v782_v6 }
 0x3e2   : > { %v3011_v8 = vpop.f32.mrf.mxu0 }
 0x3e3   : > { %v991_v62 = vadd.f32 %v3630_v29, %v3011_v8 }
 0x3e4   : > { %v792_v10 = vpop.f32.mrf.mxu0 }
 0x3e6   : > { %v3014_v14 = vpop.f32.mrf.mxu0 }
 0x3e8   : > { %v802_v24 = vpop.f32.mrf.mxu0 }
 0x3ea   : > { %v3017_v18 = vpop.f32.mrf.mxu0 }
 0x3ec   : > { %v812_v53 = vpop.f32.mrf.mxu0 }
 0x3ef   : > { %v3071_v16 = vpop.f32.mrf.mxu1 }
 0x3f0   : > { %v1350_v23 = vadd.f32 %v3071_v16, %v961_v15 }
 0x3f1   : > { %v1270_v26 = vpop.f32.mrf.mxu1 }
 0x3f2   : > { %v1462_v39 = vadd.f32 %v1389_v17, %v1350_v23  ;;  %v1349_v40 = vadd.f32 %v1270_v26, %v956_v22  ;;  %v1001_v17 = vadd.f32 %v3637_v31, %v3014_v14  ;;  %v996_v23 = vadd.f32 %v3642_v32, %v802_v24 }
 0x3f3   : > { %v3074_v42 = vpop.f32.mrf.mxu1 }
 0x3f4   : > { %v3871_v43 = vmax.f32 %v1462_v39, 0.0  ;;  %v1461_v13 = vadd.f32 %v1384_v41, %v1349_v40  ;;  %v1352_v45 = vadd.f32 %v3074_v42, %v971_v27  ;;  %v1011_v39 = vadd.f32 %v3644_v33, %v3017_v18 }
 0x3f5   : > { %v1280_v46 = vpop.f32.mrf.mxu1  ;;  %v1006_v41 = vadd.f32 %v3647_v34, %v812_v53 }
 0x3f6   : > { %v3874_v19 = vmax.f32 %v1461_v13, 0.0  ;;  %v1464_v48 = vadd.f32 %v1399_v11, %v1352_v45  ;;  %v1351_v49 = vadd.f32 %v1280_v46, %v966_v44  ;;  %1610 = vrot.lane.b32.xlu0 %v3871_v43, %s3323_s19  ;;  %v986_v11 = vadd.f32 %v3635_v30, %v792_v10 }
 0x3f7   : > { %v3077_v20 = vpop.f32.mrf.mxu1 }
 0x3f8   : > { %v3879_v51 = vmax.f32 %v1464_v48, 0.0  ;;  %v1463_v21 = vadd.f32 %v1394_v12, %v1351_v49  ;;  %v1354_v52 = vadd.f32 %v3077_v20, %v981_v47  ;;  %v3020_v12 = vpop.f32.mrf.mxu0 }
 0x3f9   : > { %v1290_v60 = vpop.f32.mrf.mxu1  ;;  %v1021_v33 = vadd.f32 %v3649_v35, %v3020_v12  ;;  %v1510_v12 = vld [vmem:[%s4522_s5 + $0x8] sm:$0xff] }
 0x3fa   : > { %v3882_v63 = vmax.f32 %v1463_v21, 0.0  ;;  %v1466_v25 = vadd.f32 %v1409_v7, %v1354_v52  ;;  %v1353_v2 = vadd.f32 %v1290_v60, %v976_v50  ;;  %1606 = vrot.lane.b32.xlu0 %v3874_v19, %s3323_s19 }
 0x3fb   : > { %v3080_v4 = vpop.f32.mrf.mxu1 }
 0x3fc   : > { %v3887_v15 = vmax.f32 %v1466_v25, 0.0  ;;  %v1465_v28 = vadd.f32 %v1404_v9, %v1353_v2  ;;  %v1356_v6 = vadd.f32 %v3080_v4, %v991_v62  ;;  %v822_v9 = vpop.f32.mrf.mxu0 }
 0x3fd   : > { %v1300_v16 = vpop.f32.mrf.mxu1  ;;  %v1016_v34 = vadd.f32 %v3652_v36, %v822_v9 }
 0x3fe   : > { %v3890_v22 = vmax.f32 %v1465_v28, 0.0  ;;  %v1468_v29 = vadd.f32 %v1419_v3, %v1356_v6  ;;  %v1355_v8 = vadd.f32 %v1300_v16, %v986_v11  ;;  %1618 = vrot.lane.b32.xlu0 %v3879_v51, %s3323_s19  ;;  %v3023_v42 = vpop.f32.mrf.mxu0  ;;  %v2744_v28 = vld [vmem:[%s4522_s5 + $0x80] sm:$0xff] }
 0x3ff   : > { %v3083_v7 = vpop.f32.mrf.mxu1  ;;  %v1031_v35 = vadd.f32 %v3654_v37, %v3023_v42  ;;  %v1509_v6 = vld [vmem:[%s4522_s5] sm:$0xff]  ;;  %3125 = vmatprep.mubr.f32.mxu0 %v2744_v28 }
 0x400   : > { %v3895_v26 = vmax.f32 %v1468_v29, 0.0  ;;  %v1467_v30 = vadd.f32 %v1414_v5, %v1355_v8  ;;  %v1358_v10 = vadd.f32 %v3083_v7, %v1001_v17  ;;  %v832_v48 = vpop.f32.mrf.mxu0  ;;  %3181 = vmatprep.mubr.f32.mxu1 %v1509_v6  ;;  %v1511_v17 = vld [vmem:[%s4522_s5 + $0x10] sm:$0xff]  ;;  %v1512_v29 = vld [vmem:[%s4522_s5 + $0x18] sm:$0xff]  ;;  %v1513_v7 = vld [vmem:[%s4522_s5 + $0x20] sm:$0xff] }
 0x401   : > { %v1310_v27 = vpop.f32.mrf.mxu1  ;;  %v1026_v36 = vadd.f32 %v3657_v38, %v832_v48  ;;  %v3960_v38 = vpop.permute.xlu1 %1668 }
 0x402   : > { %v3898_v40 = vmax.f32 %v1467_v30, 0.0  ;;  %v1470_v31 = vadd.f32 %v3863_v61, %v1358_v10  ;;  %v1357_v3 = vadd.f32 %v1310_v27, %v996_v23  ;;  %1614 = vrot.lane.b32.xlu0 %v3882_v63, %s3323_s19  ;;  %v1514_v23 = vld [vmem:[%s4522_s5 + $0x28] sm:$0xff]  ;;  %v1515_v30 = vld [vmem:[%s4522_s5 + $0x30] sm:$0xff]  ;;  %v1516_v10 = vld [vmem:[%s4522_s5 + $0x38] sm:$0xff] }
 0x403   : > { %v3086_v14 = vpop.f32.mrf.mxu1  ;;  %v1517_v27 = vld [vmem:[%s4522_s5 + $0x40] sm:$0xff] }
 0x404   : > { %v3904_v32 = vmax.f32 %v1470_v31, 0.0  ;;  %v1469_v5 = vadd.f32 %v3865_v1, %v1357_v3  ;;  %v1360_v24 = vadd.f32 %v3086_v14, %v1011_v39  ;;  %v1519_v31 = vld [vmem:[%s4522_s5 + $0x50] sm:$0xff]  ;;  %v1520_v3 = vld [vmem:[%s4522_s5 + $0x58] sm:$0xff]  ;;  %v1521_v14 = vld [vmem:[%s4522_s5 + $0x60] sm:$0xff] }
 0x405   : > { %v1320_v44 = vpop.f32.mrf.mxu1 }
 0x406   : > { %v3908_v13 = vmax.f32 %v1469_v5, 0.0  ;;  %v1472_v61 = vadd.f32 %v3859_v58, %v1360_v24  ;;  %v1359_v45 = vadd.f32 %v1320_v44, %v1006_v41  ;;  %1626 = vrot.lane.b32.xlu0 %v3887_v15, %s3323_s19 }
 0x407   : > { %v3089_v18 = vpop.f32.mrf.mxu1 }
 0x408   : > { %v3914_v46 = vmax.f32 %v1472_v61, 0.0  ;;  %v1471_v1 = vadd.f32 %v3861_v59, %v1359_v45  ;;  %v1362_v47 = vadd.f32 %v3089_v18, %v1021_v33 }
 0x409   : > { %v1330_v49 = vpop.f32.mrf.mxu1 }
 0x40a   : > { %v3918_v20 = vmax.f32 %v1471_v1, 0.0  ;;  %v1474_v58 = vadd.f32 %v3855_v56, %v1362_v47  ;;  %v1361_v50 = vadd.f32 %v1330_v49, %v1016_v34  ;;  %1622 = vrot.lane.b32.xlu0 %v3890_v22, %s3323_s19  ;;  %v2272_v34 = vld [vmem:[%s4523_s6 + $0x30] sm:$0xff]  ;;  %v2274_v1 = vld [vmem:[%s4523_s6 + $0x40] sm:$0xff] }
 0x40b   : > { %v3092_v21 = vpop.f32.mrf.mxu1  ;;  %v2276_v49 = vld [vmem:[%s4523_s6 + $0x50] sm:$0xff] }
 0x40c   : > { %v1490_v52 = vmax.f32 %v1474_v58, 0.0  ;;  %v1473_v53 = vadd.f32 %v3857_v57, %v1361_v50  ;;  %v1364_v59 = vadd.f32 %v3092_v21, %v1031_v35  ;;  %v2278_v58 = vld [vmem:[%s4523_s6 + $0x60] sm:$0xff]  ;;  %v2280_v21 = vld [vmem:[%s4523_s6 + $0x70] sm:$0xff] }
 0x40d   : > { %v1340_v60 = vpop.f32.mrf.mxu1 }
 0x40e   : > { %v1489_v62 = vmax.f32 %v1473_v53, 0.0  ;;  %v1476_v25 = vadd.f32 %v3851_v54, %v1364_v59  ;;  %v1363_v37 = vadd.f32 %v1340_v60, %v1026_v36  ;;  %1634 = vrot.lane.b32.xlu0 %v3895_v26, %s3323_s19  ;;  %v3970_v54 = vpop.permute.xlu1 %1664  ;;  %v2519_v53 = vld [vmem:[%s4525_s8] sm:$0x3] }
 0x410   : > { %v1492_v56 = vmax.f32 %v1476_v25, 0.0  ;;  %v1475_v2 = vadd.f32 %v3853_v55, %v1363_v37 }
 0x412   : > { %v3929_v4 = vmax.f32 %v1475_v2, 0.0  ;;  %3149 = vmatprep.subr.mxu1 %v1492_v56  ;;  %1630 = vrot.lane.b32.xlu0 %v3898_v40, %s3323_s19  ;;  %v3976_v55 = vpop.permute.xlu1 %1660 }
 0x413   : > { %3150 = vmatpush3.msra.mxu1 %v1492_v56 }
 0x414   : > { %3151 = vmatprep.subr.mxu1 %v3929_v4 }
 0x415   : > { %3152 = vmatpush3.msra.mxu1 %v3929_v4 }
 0x416   : > { %3153 = vmatprep.subr.mxu1 %v1490_v52  ;;  %1642 = vrot.lane.b32.xlu0 %v3904_v32, %s3323_s19  ;;  %v3981_v57 = vpop.permute.xlu1 %1656 }
 0x417   : > { %3154 = vmatpush3.msra.mxu1 %v1490_v52 }
 0x418   : > { %3155 = vmatprep.subr.mxu1 %v1489_v62 }
 0x419   : > { %3156 = vmatpush3.msra.mxu1 %v1489_v62 }
 0x41a   : > { %3157 = vmatprep.subr.mxu1 %v3914_v46  ;;  %1638 = vrot.lane.b32.xlu0 %v3908_v13, %s3323_s19  ;;  %v3984_v11 = vpop.permute.xlu1 %1652 }
 0x41b   : > { %3158 = vmatpush3.msra.mxu1 %v3914_v46 }
 0x41c   : > { %3159 = vmatprep.subr.mxu1 %v3918_v20 }
 0x41d   : > { %3160 = vmatpush3.msra.mxu1 %v3918_v20 }
 0x41e   : > { %3161 = vmatprep.subr.mxu1 %v3904_v32  ;;  %1650 = vrot.lane.b32.xlu0 %v3914_v46, %s3323_s19  ;;  %v3999_v16 = vpop.permute.xlu1 %1648 }
 0x41f   : > { %3162 = vmatpush3.msra.mxu1 %v3904_v32 }
 0x420   : > { %3163 = vmatprep.subr.mxu1 %v3908_v13 }
 0x421   : > { %3164 = vmatpush3.msra.mxu1 %v3908_v13 }
 0x422   : > { %3165 = vmatprep.subr.mxu1 %v3895_v26  ;;  %1646 = vrot.lane.b32.xlu0 %v3918_v20, %s3323_s19  ;;  %v4009_v8 = vpop.permute.xlu1 %1644 }
 0x423   : > { %3166 = vmatpush3.msra.mxu1 %v3895_v26 }
 0x424   : > { %3167 = vmatprep.subr.mxu1 %v3898_v40 }
 0x425   : > { %3168 = vmatpush3.msra.mxu1 %v3898_v40 }
 0x426   : > { %3169 = vmatprep.subr.mxu1 %v3887_v15  ;;  %1658 = vrot.lane.b32.xlu0 %v1490_v52, %s3323_s19  ;;  %v4027_v9 = vpop.permute.xlu1 %1640 }
 0x427   : > { %3170 = vmatpush3.msra.mxu1 %v3887_v15 }
 0x428   : > { %3171 = vmatprep.subr.mxu1 %v3890_v22 }
 0x429   : > { %3172 = vmatpush3.msra.mxu1 %v3890_v22 }
 0x42a   : > { %3173 = vmatprep.subr.mxu1 %v3879_v51  ;;  %1654 = vrot.lane.b32.xlu0 %v1489_v62, %s3323_s19  ;;  %v4037_v39 = vpop.permute.xlu1 %1636 }
 0x42b   : > { %3174 = vmatpush3.msra.mxu1 %v3879_v51 }
 0x42c   : > { %3175 = vmatprep.subr.mxu1 %v3882_v63 }
 0x42d   : > { %3176 = vmatpush3.msra.mxu1 %v3882_v63 }
 0x42e   : > { %3177 = vmatprep.subr.mxu1 %v3871_v43  ;;  %1666 = vrot.lane.b32.xlu0 %v1492_v56, %s3323_s19  ;;  %v4055_v41 = vpop.permute.xlu1 %1632 }
 0x42f   : > { %3178 = vmatpush3.msra.mxu1 %v3871_v43 }
 0x430   : > { %3179 = vmatprep.subr.mxu1 %v3874_v19 }
 0x431   : > { %3180 = vmatpush3.msra.mxu1 %v3874_v19 }
 0x432   : > { %2069 = vrot.lane.b32.xlu0 %v1492_v56, %s3324_s20  ;;  %3261 = vmatprep.subr.mxu1 %v3320_v0  ;;  %v4067_v5 = vpop.permute.xlu1 %1628 }
 0x433   : > { %3182 = vmatmul.mubr.f32.vlgmr.msra.gmra.mxu1 %v1510_v12 }
 0x434   : > { %3184 = vmatprep.mubr.f32.mxu1 %v1511_v17 }
 0x436   : > { %1662 = vrot.lane.b32.xlu0 %v3929_v4, %s3323_s19 }
 0x437   : > { %3185 = vmatmul.mubr.f32.gmra.mxu1 %v1512_v29 }
 0x438   : > { %3187 = vmatprep.mubr.f32.mxu1 %v1513_v7 }
 0x43a   : > { %2061 = vrot.lane.b32.xlu0 %v1490_v52, %s3324_s20 }
 0x43b   : > { %3188 = vmatmul.mubr.f32.gmra.mxu1 %v1514_v23 }
 0x43c   : > { %3190 = vmatprep.mubr.f32.mxu1 %v1515_v30 }
 0x43e   : > { %2057 = vrot.lane.b32.xlu0 %v1489_v62, %s3324_s20 }
 0x43f   : > { %3191 = vmatmul.mubr.f32.gmra.mxu1 %v1516_v10 }
 0x440   : > { %3193 = vmatprep.mubr.f32.mxu1 %v1517_v27 }
 0x442   : > { %2053 = vrot.lane.b32.xlu0 %v3914_v46, %s3324_s20 }
 0x446   : > { %2049 = vrot.lane.b32.xlu0 %v3918_v20, %s3324_s20 }
 0x44a   : > { %2045 = vrot.lane.b32.xlu0 %v3904_v32, %s3324_s20  ;;  %v1523_v32 = vld [vmem:[%s4522_s5 + $0x70] sm:$0xff] }
 0x44e   : > { %2041 = vrot.lane.b32.xlu0 %v3908_v13, %s3324_s20 }
 0x452   : > { %2037 = vrot.lane.b32.xlu0 %v3895_v26, %s3324_s20  ;;  %v1518_v26 = vld [vmem:[%s4522_s5 + $0x48] sm:$0xff] }
 0x453   : > { %3194 = vmatmul.mubr.f32.gmra.mxu1 %v1518_v26 }
 0x454   : > { %3196 = vmatprep.mubr.f32.mxu1 %v1519_v31 }
 0x456   : > { %2065 = vrot.lane.b32.xlu0 %v3929_v4, %s3324_s20 }
 0x457   : > { %3197 = vmatmul.mubr.f32.gmra.mxu1 %v1520_v3 }
 0x458   : > { %3199 = vmatprep.mubr.f32.mxu1 %v1521_v14 }
 0x45a   : > { %2033 = vrot.lane.b32.xlu0 %v3898_v40, %s3324_s20  ;;  %v1522_v40 = vld [vmem:[%s4522_s5 + $0x68] sm:$0xff] }
 0x45b   : > { %3200 = vmatmul.mubr.f32.gmra.mxu1 %v1522_v40 }
 0x45c   : > { %3202 = vmatprep.mubr.f32.mxu1 %v1523_v32 }
 0x45e   : > { %2029 = vrot.lane.b32.xlu0 %v3887_v15, %s3324_s20  ;;  %v1524_v15 = vld [vmem:[%s4522_s5 + $0x78] sm:$0xff] }
 0x45f   : > { %3203 = vmatmul.mubr.f32.gmra.mxu1 %v1524_v15 }
 0x460   : > { %3293 = vmatprep.mubr.msk.f32.mxu1 %vm3321_vm0, %v3320_v0 }
 0x462   : > { %2025 = vrot.lane.b32.xlu0 %v3890_v22, %s3324_s20  ;;  %v4075_v22 = vpop.permute.xlu1 %1624 }
 0x466   : > { %2021 = vrot.lane.b32.xlu0 %v3879_v51, %s3324_s20  ;;  %v4083_v33 = vpop.permute.xlu1 %1620  ;;  %v2266_v51 = vld [vmem:[%s4523_s6] sm:$0xff] }
 0x468   : > { %v4071_v24 = vpop.permute.xlu0 %1610 }
 0x46a   : > { %2017 = vrot.lane.b32.xlu0 %v3882_v63, %s3324_s20  ;;  %v2268_v63 = vld [vmem:[%s4523_s6 + $0x10] sm:$0xff]  ;;  %v4095_v61 = vpop.permute.xlu1 %1616 }
 0x46c   : > { %v4077_v42 = vpop.permute.xlu0 %1606 }
 0x46e   : > { %2013 = vrot.lane.b32.xlu0 %v3871_v43, %s3324_s20  ;;  %v4104_v18 = vpop.permute.xlu1 %1612 }
 0x46f   : > { %v1671_v15 = vsel %vm403_vm2, %v4071_v24, %v4104_v18 }
 0x470   : > { %v4081_v44 = vpop.permute.xlu0 %1618 }
 0x471   : > { %v1673_v14 = vsel %vm403_vm2, %v4081_v44, %v4083_v33  ;;  %v2745_v44 = vld [vmem:[%s4522_s5 + $0x88] sm:$0xff] }
 0x472   : > { %2009 = vrot.lane.b32.xlu0 %v3874_v19, %s3324_s20  ;;  %v2270_v19 = vld [vmem:[%s4523_s6 + $0x20] sm:$0xff]  ;;  %v4112_v47 = vpop.permute.xlu1 %1608 }
 0x474   : > { %v4090_v13 = vpop.permute.xlu0 %1614 }
 0x475   : > { %v1672_v32 = vsel %vm403_vm2, %v4090_v13, %v4095_v61  ;;  %v2748_v61 = vld [vmem:[%s4522_s5 + $0xa0] sm:$0xff] }
 0x476   : > { %2284 = vperm.xlu0 %3310, %v2266_v51   ;;  %v4117_v20 = vpop.permute.xlu1 %2071  ;;  %v2746_v51 = vld [vmem:[%s4522_s5 + $0x90] sm:$0xff] }
 0x478   : > { %v4097_v43 = vpop.permute.xlu0 %1626 }
 0x479   : > { %v1675_v3 = vsel %vm403_vm2, %v4097_v43, %v4067_v5 }
 0x47a   : > { %2294 = vperm.xlu0 %3310, %v2268_v63   ;;  %v4125_v36 = vpop.permute.xlu1 %2067  ;;  %v2747_v63 = vld [vmem:[%s4522_s5 + $0x98] sm:$0xff] }
 0x47c   : > { %v4102_v45 = vpop.permute.xlu0 %1622 }
 0x47e   : > { %2304 = vperm.xlu0 %3310, %v2270_v19   ;;  %v4130_v60 = vpop.permute.xlu1 %2063 }
 0x480   : > { %v1635_v46 = vpop.permute.xlu0 %1634 }
 0x481   : > { %v1677_v26 = vsel %vm403_vm2, %v1635_v46, %v4037_v39  ;;  %v1674_v39 = vsel %vm403_vm2, %v4102_v45, %v4075_v22  ;;  %v1670_v22 = vsel %vm403_vm2, %v4077_v42, %v4112_v47  ;;  %v2750_v46 = vld [vmem:[%s4522_s5 + $0xb0] sm:$0xff] }
 0x482   : > { %2314 = vperm.xlu0 %3310, %v2272_v34   ;;  %v4132_v25 = vpop.permute.xlu1 %2059  ;;  %v2749_v34 = vld [vmem:[%s4522_s5 + $0xa8] sm:$0xff] }
 0x484   : > { %v1631_v48 = vpop.permute.xlu0 %1630 }
 0x486   : > { %2324 = vperm.xlu0 %3310, %v2274_v1   ;;  %v4136_v4 = vpop.permute.xlu1 %2055 }
 0x488   : > { %v1643_v35 = vpop.permute.xlu0 %1642 }
 0x489   : > { %v1679_v10 = vsel %vm403_vm2, %v1643_v35, %v4009_v8  ;;  %v1676_v8 = vsel %vm403_vm2, %v1631_v48, %v4055_v41 }
 0x48a   : > { %2334 = vperm.xlu0 %3310, %v2276_v49   ;;  %v4140_v6 = vpop.permute.xlu1 %2051  ;;  %v2751_v49 = vld [vmem:[%s4522_s5 + $0xb8] sm:$0xff] }
 0x48c   : > { %v1639_v50 = vpop.permute.xlu0 %1638 }
 0x48e   : > { %2344 = vperm.xlu0 %3310, %v2278_v58   ;;  %v4150_v23 = vpop.permute.xlu1 %2047 }
 0x490   : > { %v1651_v52 = vpop.permute.xlu0 %1650 }
 0x491   : > { %v1681_v30 = vsel %vm403_vm2, %v1651_v52, %v3984_v11  ;;  %v1678_v11 = vsel %vm403_vm2, %v1639_v50, %v4027_v9  ;;  %v2754_v52 = vld [vmem:[%s4522_s5 + $0xd0] sm:$0xff] }
 0x492   : > { %2354 = vperm.xlu0 %3310, %v2280_v21  }
 0x494   : > { %v1647_v59 = vpop.permute.xlu0 %1646 }
 0x496   : > { %2522 = vperm.xlu0 %3310, %v2519_v53  }
 0x498   : > { %v1659_v62 = vpop.permute.xlu0 %1658 }
 0x499   : > { %v1683_v29 = vsel %vm403_vm2, %v1659_v62, %v3976_v55  ;;  %v1680_v55 = vsel %vm403_vm2, %v1647_v59, %v3999_v16 }
 0x49c   : > { %v1655_v37 = vpop.permute.xlu0 %1654 }
 0x4a0   : > { %v1667_v56 = vpop.permute.xlu0 %1666 }
 0x4a1   : > { %v1685_v2 = vsel %vm403_vm2, %v1667_v56, %v3960_v38  ;;  %v1682_v38 = vsel %vm403_vm2, %v1655_v37, %v3981_v57  ;;  %v4160_v57 = vpop.permute.xlu1 %2043  ;;  %v2756_v37 = vld [vmem:[%s4522_s5 + $0xe0] sm:$0xff] }
 0x4a2   : > { %3093 = vmatprep.subr.mxu0 %v1685_v2 }
 0x4a3   : > { %3094 = vmatpush3.msra.mxu0 %v1685_v2 }
 0x4a4   : > { %v4138_v28 = vpop.permute.xlu0 %2069 }
 0x4a5   : > { %v4170_v31 = vpop.permute.xlu1 %2039  ;;  %v2088_v24 = vsel %vm410_vm1, %v4138_v28, %v4117_v20  ;;  %v2752_v20 = vld [vmem:[%s4522_s5 + $0xc0] sm:$0xff]  ;;  %v2757_v28 = vld [vmem:[%s4522_s5 + $0xe8] sm:$0xff] }
 0x4a8   : > { %v1663_v12 = vpop.permute.xlu0 %1662 }
 0x4a9   : > { %v1684_v17 = vsel %vm403_vm2, %v1663_v12, %v3970_v54  ;;  %v4181_v40 = vpop.permute.xlu1 %2035  ;;  %v2758_v12 = vld [vmem:[%s4522_s5 + $0xf0] sm:$0xff] }
 0x4aa   : > { %3095 = vmatprep.subr.mxu0 %v1684_v17 }
 0x4ab   : > { %3096 = vmatpush3.msra.mxu0 %v1684_v17 }
 0x4ac   : > { %v4146_v7 = vpop.permute.xlu0 %2061  ;;  %3097 = vmatprep.subr.mxu0 %v1683_v29 }
 0x4ad   : > { %3098 = vmatpush3.msra.mxu0 %v1683_v29  ;;  %v4195_v33 = vpop.permute.xlu1 %2031  ;;  %v2086_v43 = vsel %vm410_vm1, %v4146_v7, %v4130_v60 }
 0x4ae   : > { %3099 = vmatprep.subr.mxu0 %v1682_v38 }
 0x4af   : > { %3100 = vmatpush3.msra.mxu0 %v1682_v38  ;;  %v2759_v38 = vld [vmem:[%s4522_s5 + $0xf8] sm:$0xff] }
 0x4b0   : > { %v4154_v54 = vpop.permute.xlu0 %2057  ;;  %3101 = vmatprep.subr.mxu0 %v1681_v30 }
 0x4b1   : > { %3102 = vmatpush3.msra.mxu0 %v1681_v30  ;;  %v2028_v19 = vpop.permute.xlu1 %2027  ;;  %v2085_v18 = vsel %vm410_vm1, %v4154_v54, %v4132_v25  ;;  %v2755_v25 = vld [vmem:[%s4522_s5 + $0xd8] sm:$0xff] }
 0x4b2   : > { %3103 = vmatprep.subr.mxu0 %v1680_v55 }
 0x4b3   : > { %3104 = vmatpush3.msra.mxu0 %v1680_v55 }
 0x4b4   : > { %v4162_v27 = vpop.permute.xlu0 %2053  ;;  %3105 = vmatprep.subr.mxu0 %v1679_v10 }
 0x4b5   : > { %3106 = vmatpush3.msra.mxu0 %v1679_v10  ;;  %v2084_v1 = vsel %vm410_vm1, %v4162_v27, %v4136_v4  ;;  %v2024_v35 = vpop.permute.xlu1 %2023  ;;  %v2762_v27 = vld [vmem:[%s4522_s5 + $0x110] sm:$0xff] }
 0x4b6   : > { %3107 = vmatprep.subr.mxu0 %v1678_v11 }
 0x4b7   : > { %3108 = vmatpush3.msra.mxu0 %v1678_v11  ;;  %v2763_v11 = vld [vmem:[%s4522_s5 + $0x118] sm:$0xff] }
 0x4b8   : > { %v2050_v16 = vpop.permute.xlu0 %2049  ;;  %3109 = vmatprep.subr.mxu0 %v1677_v26 }
 0x4b9   : > { %3110 = vmatpush3.msra.mxu0 %v1677_v26  ;;  %v2083_v48 = vsel %vm410_vm1, %v2050_v16, %v4140_v6  ;;  %v2020_v59 = vpop.permute.xlu1 %2019  ;;  %v2764_v26 = vld [vmem:[%s4522_s5 + $0x120] sm:$0xff]  ;;  %v2765_v16 = vld [vmem:[%s4522_s5 + $0x128] sm:$0xff] }
 0x4ba   : > { %3111 = vmatprep.subr.mxu0 %v1676_v8 }
 0x4bb   : > { %3112 = vmatpush3.msra.mxu0 %v1676_v8  ;;  %v2766_v8 = vld [vmem:[%s4522_s5 + $0x130] sm:$0xff] }
 0x4bc   : > { %v2046_v9 = vpop.permute.xlu0 %2045  ;;  %3113 = vmatprep.subr.mxu0 %v1675_v3 }
 0x4bd   : > { %3114 = vmatpush3.msra.mxu0 %v1675_v3  ;;  %v2082_v58 = vsel %vm410_vm1, %v2046_v9, %v4150_v23  ;;  %v2016_v6 = vpop.permute.xlu1 %2015  ;;  %v2760_v23 = vld [vmem:[%s4522_s5 + $0x100] sm:$0xff]  ;;  %v2769_v9 = vld [vmem:[%s4522_s5 + $0x148] sm:$0xff] }
 0x4be   : > { %3115 = vmatprep.subr.mxu0 %v1674_v39  ;;  %v2768_v3 = vld [vmem:[%s4522_s5 + $0x140] sm:$0xff] }
 0x4bf   : > { %3116 = vmatpush3.msra.mxu0 %v1674_v39  ;;  %v2770_v39 = vld [vmem:[%s4522_s5 + $0x150] sm:$0xff] }
 0x4c0   : > { %v2042_v41 = vpop.permute.xlu0 %2041  ;;  %3117 = vmatprep.subr.mxu0 %v1673_v14 }
 0x4c1   : > { %3118 = vmatpush3.msra.mxu0 %v1673_v14  ;;  %v2081_v21 = vsel %vm410_vm1, %v2042_v41, %v4160_v57  ;;  %v2012_v54 = vpop.permute.xlu1 %2011  ;;  %v2761_v57 = vld [vmem:[%s4522_s5 + $0x108] sm:$0xff]  ;;  %v2771_v14 = vld [vmem:[%s4522_s5 + $0x158] sm:$0xff] }
 0x4c2   : > { %3119 = vmatprep.subr.mxu0 %v1672_v32  ;;  %v2773_v41 = vld [vmem:[%s4522_s5 + $0x168] sm:$0xff] }
 0x4c3   : > { %3120 = vmatpush3.msra.mxu0 %v1672_v32  ;;  %v2774_v32 = vld [vmem:[%s4522_s5 + $0x170] sm:$0xff] }
 0x4c4   : > { %v2038_v5 = vpop.permute.xlu0 %2037  ;;  %3121 = vmatprep.subr.mxu0 %v1671_v15 }
 0x4c5   : > { %3122 = vmatpush3.msra.mxu0 %v1671_v15  ;;  %v2080_v53 = vsel %vm410_vm1, %v2038_v5, %v4170_v31  ;;  %v2767_v31 = vld [vmem:[%s4522_s5 + $0x138] sm:$0xff] }
 0x4c6   : > { %3123 = vmatprep.subr.mxu0 %v1670_v22  ;;  %v2775_v15 = vld [vmem:[%s4522_s5 + $0x178] sm:$0xff] }
 0x4c7   : > { %3124 = vmatpush3.msra.mxu0 %v1670_v22  ;;  %v2518_v5 = vld [vmem:[%s4526_s9 + $0x78] sm:$0xff]  ;;  %v2517_v22 = vld [vmem:[%s4526_s9 + $0x70] sm:$0xff] }
 0x4c8   : > { %v2066_v13 = vpop.permute.xlu0 %2065  ;;  %3126 = vmatmul.mubr.f32.vlgmr.msra.gmra.mxu0 %v2745_v44  ;;  %3205 = vmatprep.subr.mxu0 %v2088_v24  ;;  %v2516_v44 = vld [vmem:[%s4526_s9 + $0x68] sm:$0xff] }
 0x4c9   : > { %3206 = vmatpush3.msra.mxu0 %v2088_v24  ;;  %v2087_v42 = vsel %vm410_vm1, %v2066_v13, %v4125_v36  ;;  %3128 = vmatprep.mubr.f32.mxu0 %v2746_v51  ;;  %v2753_v36 = vld [vmem:[%s4522_s5 + $0xc8] sm:$0xff]  ;;  %v2514_v51 = vld [vmem:[%s4526_s9 + $0x58] sm:$0xff]  ;;  %v2513_v24 = vld [vmem:[%s4526_s9 + $0x50] sm:$0xff] }
 0x4ca   : > { %3207 = vmatprep.subr.mxu0 %v2087_v42  ;;  %3262 = vmatpush3.msra.mxu1 %v2518_v5  ;;  %v2512_v13 = vld [vmem:[%s4526_s9 + $0x48] sm:$0xff] }
 0x4cb   : > { %3208 = vmatpush3.msra.mxu0 %v2087_v42  ;;  %3263 = vmatprep.subr.mxu1 %v3320_v0  ;;  %v2511_v42 = vld [vmem:[%s4526_s9 + $0x40] sm:$0xff] }
 0x4cc   : > { %v2034_v45 = vpop.permute.xlu0 %2033  ;;  %3129 = vmatmul.mubr.f32.gmra.mxu0 %v2747_v63  ;;  %3209 = vmatprep.subr.mxu0 %v2086_v43  ;;  %v2510_v63 = vld [vmem:[%s4526_s9 + $0x38] sm:$0xff] }
 0x4cd   : > { %3210 = vmatpush3.msra.mxu0 %v2086_v43  ;;  %3131 = vmatprep.mubr.f32.mxu0 %v2748_v61  ;;  %v2079_v62 = vsel %vm410_vm1, %v2034_v45, %v4181_v40  ;;  %v2772_v40 = vld [vmem:[%s4522_s5 + $0x160] sm:$0xff]  ;;  %v2509_v61 = vld [vmem:[%s4526_s9 + $0x30] sm:$0xff]  ;;  %v2508_v43 = vld [vmem:[%s4526_s9 + $0x28] sm:$0xff] }
 0x4ce   : > { %3211 = vmatprep.subr.mxu0 %v2085_v18  ;;  %3264 = vmatpush3.msra.mxu1 %v2517_v22  ;;  %v2506_v45 = vld [vmem:[%s4526_s9 + $0x18] sm:$0xff] }
 0x4cf   : > { %3212 = vmatpush3.msra.mxu0 %v2085_v18  ;;  %3265 = vmatprep.subr.mxu1 %v3320_v0  ;;  %v2505_v18 = vld [vmem:[%s4526_s9 + $0x10] sm:$0xff] }
 0x4d0   : > { %v2030_v47 = vpop.permute.xlu0 %2029  ;;  %3132 = vmatmul.mubr.f32.gmra.mxu0 %v2749_v34  ;;  %3213 = vmatprep.subr.mxu0 %v2084_v1  ;;  %v2504_v34 = vld [vmem:[%s4526_s9 + $0x8] sm:$0xff] }
 0x4d1   : > { %3214 = vmatpush3.msra.mxu0 %v2084_v1  ;;  %3134 = vmatprep.mubr.f32.mxu0 %v2750_v46  ;;  %v2078_v56 = vsel %vm410_vm1, %v2030_v47, %v4195_v33  ;;  %v2515_v33 = vld [vmem:[%s4526_s9 + $0x60] sm:$0xff] }
 0x4d2   : > { %3215 = vmatprep.subr.mxu0 %v2083_v48  ;;  %3266 = vmatpush3.msra.mxu1 %v2516_v44  ;;  %v2503_v46 = vld [vmem:[%s4526_s9] sm:$0xff] }
 0x4d3   : > { %3216 = vmatpush3.msra.mxu0 %v2083_v48  ;;  %3267 = vmatprep.subr.mxu1 %v3320_v0 }
 0x4d4   : > { %v2026_v50 = vpop.permute.xlu0 %2025  ;;  %3135 = vmatmul.mubr.f32.gmra.mxu0 %v2751_v49  ;;  %3217 = vmatprep.subr.mxu0 %v2082_v58 }
 0x4d5   : > { %3218 = vmatpush3.msra.mxu0 %v2082_v58  ;;  %3137 = vmatprep.mubr.f32.mxu0 %v2752_v20  ;;  %v2077_v4 = vsel %vm410_vm1, %v2026_v50, %v2028_v19  ;;  %v2507_v19 = vld [vmem:[%s4526_s9 + $0x20] sm:$0xff] }
 0x4d6   : > { %3219 = vmatprep.subr.mxu0 %v2081_v21  ;;  %3268 = vmatpush3.msra.mxu1 %v2515_v33 }
 0x4d7   : > { %3220 = vmatpush3.msra.mxu0 %v2081_v21  ;;  %3269 = vmatprep.subr.mxu1 %v3320_v0 }
 0x4d8   : > { %v2022_v60 = vpop.permute.xlu0 %2021  ;;  %3138 = vmatmul.mubr.f32.gmra.mxu0 %v2753_v36  ;;  %3221 = vmatprep.subr.mxu0 %v2080_v53 }
 0x4d9   : > { %3222 = vmatpush3.msra.mxu0 %v2080_v53  ;;  %3140 = vmatprep.mubr.f32.mxu0 %v2754_v52  ;;  %v2076_v17 = vsel %vm410_vm1, %v2022_v60, %v2024_v35 }
 0x4da   : > { %3223 = vmatprep.subr.mxu0 %v2079_v62  ;;  %3270 = vmatpush3.msra.mxu1 %v2514_v51  ;;  %v2776_v51 = vld [vmem:[%s4524_s7 + $0x80] sm:$0xff] }
 0x4db   : > { %3224 = vmatpush3.msra.mxu0 %v2079_v62  ;;  %3271 = vmatprep.subr.mxu1 %v3320_v0 }
 0x4dc   : > { %v2018_v2 = vpop.permute.xlu0 %2017  ;;  %3141 = vmatmul.mubr.f32.gmra.mxu0 %v2755_v25  ;;  %3225 = vmatprep.subr.mxu0 %v2078_v56 }
 0x4dd   : > { %3226 = vmatpush3.msra.mxu0 %v2078_v56  ;;  %3143 = vmatprep.mubr.f32.mxu0 %v2756_v37  ;;  %v2075_v7 = vsel %vm410_vm1, %v2018_v2, %v2020_v59  ;;  %v2290_v56 = vpop.permute.xlu1 %2289 }
 0x4de   : > { %3227 = vmatprep.subr.mxu0 %v2077_v4  ;;  %3272 = vmatpush3.msra.mxu1 %v2513_v24 }
 0x4df   : > { %3228 = vmatpush3.msra.mxu0 %v2077_v4  ;;  %3273 = vmatprep.subr.mxu1 %v3320_v0 }
 0x4e0   : > { %v2014_v29 = vpop.permute.xlu0 %2013  ;;  %3144 = vmatmul.mubr.f32.gmra.mxu0 %v2757_v28  ;;  %3229 = vmatprep.subr.mxu0 %v2076_v17 }
 0x4e1   : > { %3230 = vmatpush3.msra.mxu0 %v2076_v17  ;;  %3146 = vmatprep.mubr.f32.mxu0 %v2758_v12  ;;  %v2074_v30 = vsel %vm410_vm1, %v2014_v29, %v2016_v6  ;;  %v2300_v17 = vpop.permute.xlu1 %2299 }
 0x4e2   : > { %3231 = vmatprep.subr.mxu0 %v2075_v7  ;;  %3274 = vmatpush3.msra.mxu1 %v2512_v13 }
 0x4e3   : > { %3232 = vmatpush3.msra.mxu0 %v2075_v7  ;;  %3275 = vmatprep.subr.mxu1 %v3320_v0 }
 0x4e4   : > { %v2010_v55 = vpop.permute.xlu0 %2009  ;;  %3147 = vmatmul.mubr.f32.gmra.mxu0 %v2759_v38  ;;  %3233 = vmatprep.subr.mxu0 %v2074_v30 }
 0x4e5   : > { %3234 = vmatpush3.msra.mxu0 %v2074_v30  ;;  %v2073_v10 = vsel %vm410_vm1, %v2010_v55, %v2012_v54  ;;  %3237 = vmatprep.mubr.f32.mxu0 %v2760_v23 }
 0x4e6   : > { %3235 = vmatprep.subr.mxu0 %v2073_v10  ;;  %3276 = vmatpush3.msra.mxu1 %v2511_v42  ;;  %v2395_v42 = vld [vmem:[%s4524_s7 + $0x8] sm:$0xff] }
 0x4e7   : > { %3236 = vmatpush3.msra.mxu0 %v2073_v10  ;;  %3277 = vmatprep.subr.mxu1 %v3320_v0  ;;  %v2310_v10 = vpop.permute.xlu1 %2309 }
 0x4e8   : > { %3238 = vmatmul.mubr.f32.vlgmr.msra.gmra.mxu0 %v2761_v57  ;;  %3278 = vmatpush3.msra.mxu1 %v2510_v63 }
 0x4e9   : > { %3240 = vmatprep.mubr.f32.mxu0 %v2762_v27  ;;  %3279 = vmatprep.subr.mxu1 %v3320_v0 }
 0x4ea   : > { %3280 = vmatpush3.msra.mxu1 %v2509_v61 }
 0x4eb   : > { %3281 = vmatprep.subr.mxu1 %v3320_v0 }
 0x4ec   : > { %3241 = vmatmul.mubr.f32.gmra.mxu0 %v2763_v11  ;;  %3282 = vmatpush3.msra.mxu1 %v2508_v43  ;;  %v2777_v43 = vld [vmem:[%s4524_s7 + $0x88] sm:$0xff] }
 0x4ed   : > { %3243 = vmatprep.mubr.f32.mxu0 %v2764_v26  ;;  %3283 = vmatprep.subr.mxu1 %v3320_v0 }
 0x4ee   : > { %3284 = vmatpush3.msra.mxu1 %v2507_v19 }
 0x4ef   : > { %3285 = vmatprep.subr.mxu1 %v3320_v0 }
 0x4f0   : > { %3244 = vmatmul.mubr.f32.gmra.mxu0 %v2765_v16  ;;  %3286 = vmatpush3.msra.mxu1 %v2506_v45 }
 0x4f1   : > { %3246 = vmatprep.mubr.f32.mxu0 %v2766_v8  ;;  %3287 = vmatprep.subr.mxu1 %v3320_v0  ;;  %v2285_v2 = vpop.permute.xlu0 %2284 }
 0x4f2   : > { %3288 = vmatpush3.msra.mxu1 %v2505_v18 }
 0x4f3   : > { %3289 = vmatprep.subr.mxu1 %v3320_v0  ;;  %v3183_v1 = vpop.f32.mrf.mxu1 }
 0x4f4   : > { %3247 = vmatmul.mubr.f32.gmra.mxu0 %v2767_v31  ;;  %3290 = vmatpush3.msra.mxu1 %v2504_v34 }
 0x4f5   : > { %3249 = vmatprep.mubr.f32.mxu0 %v2768_v3  ;;  %3291 = vmatprep.subr.mxu1 %v3320_v0  ;;  %v1913_v48 = vpop.f32.mrf.mxu1  ;;  %v2295_v29 = vpop.permute.xlu0 %2294 }
 0x4f6   : > { %3292 = vmatpush3.msra.mxu1 %v2503_v46 }
 0x4f7   : > { %v3186_v20 = vpop.f32.mrf.mxu1 }
 0x4f8   : > { %3250 = vmatmul.mubr.f32.gmra.mxu0 %v2769_v9 }
 0x4f9   : > { %3252 = vmatprep.mubr.f32.mxu0 %v2770_v39  ;;  %v1923_v21 = vpop.f32.mrf.mxu1  ;;  %v2305_v57 = vpop.permute.xlu0 %2304 }
 0x4fb   : > { %v3189_v53 = vpop.f32.mrf.mxu1 }
 0x4fc   : > { %3253 = vmatmul.mubr.f32.gmra.mxu0 %v2771_v14 }
 0x4fd   : > { %3255 = vmatprep.mubr.f32.mxu0 %v2772_v40  ;;  %v1933_v62 = vpop.f32.mrf.mxu1  ;;  %v2315_v5 = vpop.permute.xlu0 %2314 }
 0x4ff   : > { %v3192_v0 = vpop.f32.mrf.mxu1 }
 0x500   : > { %3256 = vmatmul.mubr.f32.gmra.mxu0 %v2773_v41  ;;  %v2394_v41 = vld [vmem:[%s4524_s7] sm:$0xff] }
 0x501   : > { %3258 = vmatprep.mubr.f32.mxu0 %v2774_v32  ;;  %v1943_v28 = vpop.f32.mrf.mxu1 }
 0x504   : > { %3259 = vmatmul.mubr.f32.gmra.mxu0 %v2775_v15  ;;  %v2320_v15 = vpop.permute.xlu1 %2319 }
 0x513   : > { %v3195_v7 = vpop.f32.mrf.mxu1 }
 0x515   : > { %v4399_v54 = vpop.f32.mrf.mxu1 }
 0x517   : > { %v4401_v3 = vpop.f32.mrf.mxu1 }
 0x519   : > { %v1963_v13 = vpop.f32.mrf.mxu1 }
 0x588   : > { %v3127_v47 = vpop.f32.mrf.mxu0 }
 0x589   : > { %v1919_v30 = vadd.f32 %v3183_v1, %v3127_v47 }
 0x58a   : > { %v1768_v49 = vpop.f32.mrf.mxu0 }
 0x58b   : > { %v1914_v27 = vadd.f32 %v1913_v48, %v1768_v49 }
 0x58c   : > { %v3130_v35 = vpop.f32.mrf.mxu0 }
 0x58d   : > { %v1929_v16 = vadd.f32 %v3186_v20, %v3130_v35  ;;  %v2396_v35 = vld [vmem:[%s4524_s7 + $0x10] sm:$0xff] }
 0x58e   : > { %v1778_v58 = vpop.f32.mrf.mxu0  ;;  %v2778_v20 = vld [vmem:[%s4524_s7 + $0x90] sm:$0xff] }
 0x58f   : > { %v1924_v40 = vadd.f32 %v1923_v21, %v1778_v58  ;;  %v3201_v58 = vpop.f32.mrf.mxu1  ;;  %v2397_v21 = vld [vmem:[%s4524_s7 + $0x18] sm:$0xff] }
 0x590   : > { %v3133_v50 = vpop.f32.mrf.mxu0 }
 0x591   : > { %v1939_v22 = vadd.f32 %v3189_v53, %v3133_v50 }
 0x592   : > { %v1788_v36 = vpop.f32.mrf.mxu0 }
 0x593   : > { %v1934_v18 = vadd.f32 %v1933_v62, %v1788_v36 }
 0x594   : > { %v3136_v52 = vpop.f32.mrf.mxu0 }
 0x595   : > { %v1949_v47 = vadd.f32 %v3192_v0, %v3136_v52  ;;  %v2330_v0 = vpop.permute.xlu1 %2329 }
 0x596   : > { %v4381_v59 = vpop.f32.mrf.mxu0 }
 0x598   : > { %v4383_v60 = vpop.f32.mrf.mxu0 }
 0x59a   : > { %v4385_v25 = vpop.f32.mrf.mxu0 }
 0x59c   : > { %v4387_v37 = vpop.f32.mrf.mxu0 }
 0x59e   : > { %v4389_v4 = vpop.f32.mrf.mxu0 }
 0x5a0   : > { %v4391_v6 = vpop.f32.mrf.mxu0 }
 0x5a2   : > { %v4393_v12 = vpop.f32.mrf.mxu0 }
 0x5a4   : > { %v4395_v38 = vpop.f32.mrf.mxu0 }
 0x5a6   : > { %v4397_v23 = vpop.f32.mrf.mxu0 }
 0x5a8   : > { %v3239_v55 = vpop.f32.mrf.mxu0 }
 0x5a9   : > { %v2251_v11 = vadd.f32 %v3239_v55, %v1919_v30 }
 0x5aa   : > { %v2171_v26 = vpop.f32.mrf.mxu0 }
 0x5ab   : > { %v2363_v8 = vadd.f32 %v2290_v56, %v2251_v11  ;;  %v2250_v31 = vadd.f32 %v2171_v26, %v1914_v27  ;;  %v2325_v56 = vpop.permute.xlu0 %2324 }
 0x5ac   : > { %v3242_v9 = vpop.f32.mrf.mxu0 }
 0x5ad   : > { %v2362_v39 = vadd.f32 %v2285_v2, %v2250_v31  ;;  %v2253_v14 = vadd.f32 %v3242_v9, %v1929_v16  ;;  %v2379_v44 = vmax.f32 %v2363_v8, 0.0  ;;  %v1944_v2 = vadd.f32 %v1943_v28, %v4381_v59  ;;  %v2399_v28 = vld [vmem:[%s4524_s7 + $0x28] sm:$0xff] }
 0x5ae   : > { %v2181_v32 = vpop.f32.mrf.mxu0  ;;  %v1959_v8 = vadd.f32 %v3195_v7, %v4383_v60 }
 0x5af   : > { %v2378_v33 = vmax.f32 %v2362_v39, 0.0  ;;  %v2365_v24 = vadd.f32 %v2300_v17, %v2253_v14  ;;  %v2252_v63 = vadd.f32 %v2181_v32, %v1924_v40  ;;  %v2411_v48 = vmul.f32 %v2395_v42, %v2379_v44  ;;  %v1973_v39 = vpop.f32.mrf.mxu1 }
 0x5b0   : > { %v3245_v61 = vpop.f32.mrf.mxu0  ;;  %v2465_v50 = vmul.f32 %v2777_v43, %v2379_v44  ;;  %v2340_v43 = vpop.permute.xlu1 %2339 }
 0x5b1   : > { %v2410_v19 = vmul.f32 %v2394_v41, %v2378_v33  ;;  %v2255_v45 = vadd.f32 %v3245_v61, %v1939_v22  ;;  %v2464_v34 = vmul.f32 %v2776_v51, %v2378_v33  ;;  %v2364_v46 = vadd.f32 %v2295_v29, %v2252_v63  ;;  %v2779_v29 = vld [vmem:[%s4524_s7 + $0x98] sm:$0xff]  ;;  %v2398_v41 = vld [vmem:[%s4524_s7 + $0x20] sm:$0xff] }
 0x5b2   : > { %v2191_v1 = vpop.f32.mrf.mxu0  ;;  %v2381_v49 = vmax.f32 %v2365_v24, 0.0  ;;  %v1954_v33 = vadd.f32 %v4399_v54, %v4385_v25  ;;  %v1969_v51 = vadd.f32 %v4401_v3, %v4387_v37  ;;  %v2781_v24 = vld [vmem:[%s4524_s7 + $0xa8] sm:$0xff]  ;;  %v2400_v25 = vld [vmem:[%s4524_s7 + $0x30] sm:$0xff]  ;;  %v3204_v54 = vpop.f32.mrf.mxu1 }
 0x5b3   : > { %v2380_v36 = vmax.f32 %v2364_v46, 0.0  ;;  %v2367_v53 = vadd.f32 %v2310_v10, %v2255_v45  ;;  %v2254_v62 = vadd.f32 %v2191_v1, %v1934_v18  ;;  %v2426_v17 = vadd.f32 %v2411_v48, %v2410_v19  ;;  %v2335_v19 = vpop.permute.xlu0 %2334  ;;  %v2782_v37 = vld [vmem:[%s4524_s7 + $0xb0] sm:$0xff] }
 0x5b4   : > { %v3248_v52 = vpop.f32.mrf.mxu0  ;;  %v2480_v55 = vadd.f32 %v2465_v50, %v2464_v34  ;;  %v2413_v10 = vmul.f32 %v2397_v21, %v2381_v49  ;;  %v2467_v14 = vmul.f32 %v2779_v29, %v2381_v49  ;;  %v2783_v50 = vld [vmem:[%s4524_s7 + $0xb8] sm:$0xff]  ;;  %v2784_v29 = vld [vmem:[%s4524_s7 + $0xc0] sm:$0xff] }
 0x5b5   : > { %v2257_v30 = vadd.f32 %v3248_v52, %v1949_v47  ;;  %v2412_v27 = vmul.f32 %v2396_v35, %v2380_v36  ;;  %v2466_v11 = vmul.f32 %v2778_v20, %v2380_v36  ;;  %v2366_v26 = vadd.f32 %v2305_v57, %v2254_v62  ;;  %v2780_v57 = vld [vmem:[%s4524_s7 + $0xa0] sm:$0xff] }
 0x5b6   : > { %v2201_v16 = vpop.f32.mrf.mxu0  ;;  %v2383_v31 = vmax.f32 %v2367_v53, 0.0  ;;  %v1979_v20 = vadd.f32 %v3201_v58, %v4391_v6  ;;  %v1974_v58 = vadd.f32 %v1973_v39, %v4393_v12  ;;  %v2785_v12 = vld [vmem:[%s4524_s7 + $0xc8] sm:$0xff] }
 0x5b7   : > { %v2256_v9 = vadd.f32 %v2201_v16, %v1944_v2  ;;  %v2427_v40 = vadd.f32 %v2426_v17, %v2412_v27  ;;  %v2481_v59 = vadd.f32 %v2480_v55, %v2466_v11  ;;  %v2369_v60 = vadd.f32 %v2320_v15, %v2257_v30  ;;  %v2402_v17 = vld [vmem:[%s4524_s7 + $0x40] sm:$0xff]  ;;  %v1983_v30 = vpop.f32.mrf.mxu1  ;;  %v2350_v16 = vpop.permute.xlu1 %2349 }
 0x5b8   : > { %v3251_v7 = vpop.f32.mrf.mxu0  ;;  %v2382_v32 = vmax.f32 %v2366_v26, 0.0  ;;  %v1964_v15 = vadd.f32 %v1963_v13, %v4389_v4  ;;  %v2415_v45 = vmul.f32 %v2399_v28, %v2383_v31  ;;  %v2469_v48 = vmul.f32 %v2781_v24, %v2383_v31  ;;  %v2401_v13 = vld [vmem:[%s4524_s7 + $0x38] sm:$0xff] }
 0x5b9   : > { %v2368_v22 = vadd.f32 %v2315_v5, %v2256_v9  ;;  %v2259_v44 = vadd.f32 %v3251_v7, %v1959_v8  ;;  %v2428_v42 = vadd.f32 %v2427_v40, %v2413_v10  ;;  %v2482_v63 = vadd.f32 %v2481_v59, %v2467_v14  ;;  %v2345_v14 = vpop.permute.xlu0 %2344 }
 0x5ba   : > { %v2211_v61 = vpop.f32.mrf.mxu0  ;;  %v2414_v5 = vmul.f32 %v2398_v41, %v2382_v32  ;;  %v2468_v18 = vmul.f32 %v2780_v57, %v2382_v32  ;;  %v2385_v3 = vmax.f32 %v2369_v60, 0.0  ;;  %v1989_v40 = vadd.f32 %v3204_v54, %v4395_v38  ;;  %v2786_v38 = vld [vmem:[%s4524_s7 + $0xd0] sm:$0xff] }
 0x5bb   : > { %v2384_v34 = vmax.f32 %v2368_v22, 0.0  ;;  %v2371_v46 = vadd.f32 %v2330_v0, %v2259_v44  ;;  %v2258_v1 = vadd.f32 %v2211_v61, %v1954_v33  ;;  %v1984_v57 = vadd.f32 %v1983_v30, %v4397_v23  ;;  %v2404_v22 = vld [vmem:[%s4524_s7 + $0x50] sm:$0xff]  ;;  %v2405_v23 = vld [vmem:[%s4524_s7 + $0x58] sm:$0xff] }
 0x5bc   : > { %v3254_v47 = vpop.f32.mrf.mxu0  ;;  %v2429_v49 = vadd.f32 %v2428_v42, %v2414_v5  ;;  %v2483_v4 = vadd.f32 %v2482_v63, %v2468_v18  ;;  %v2417_v55 = vmul.f32 %v2401_v13, %v2385_v3  ;;  %v2471_v8 = vmul.f32 %v2783_v50, %v2385_v3  ;;  %v2406_v3 = vld [vmem:[%s4524_s7 + $0x60] sm:$0xff]  ;;  %v2407_v50 = vld [vmem:[%s4524_s7 + $0x68] sm:$0xff] }
 0x5bd   : > { %v2261_v35 = vadd.f32 %v3254_v47, %v1969_v51  ;;  %v2416_v21 = vmul.f32 %v2400_v25, %v2384_v34  ;;  %v2470_v36 = vmul.f32 %v2782_v37, %v2384_v34  ;;  %v2370_v53 = vadd.f32 %v2325_v56, %v2258_v1  ;;  %v2403_v56 = vld [vmem:[%s4524_s7 + $0x48] sm:$0xff]  ;;  %v2788_v34 = vld [vmem:[%s4524_s7 + $0xe0] sm:$0xff]  ;;  %v2360_v1 = vpop.permute.xlu1 %2359  ;;  %v2355_v47 = vpop.permute.xlu0 %2354 }
 0x5be   : > { %v2221_v62 = vpop.f32.mrf.mxu0  ;;  %v2430_v52 = vadd.f32 %v2429_v49, %v2415_v45  ;;  %v2484_v0 = vadd.f32 %v2483_v4, %v2469_v48  ;;  %v2387_v2 = vmax.f32 %v2371_v46, 0.0 }
 0x5bf   : > { %v2260_v6 = vadd.f32 %v2221_v62, %v1964_v15  ;;  %v2386_v27 = vmax.f32 %v2370_v53, 0.0  ;;  %v2373_v11 = vadd.f32 %v2340_v43, %v2261_v35  ;;  %v2789_v53 = vld [vmem:[%s4524_s7 + $0xe8] sm:$0xff] }
 0x5c0   : > { %v3257_v26 = vpop.f32.mrf.mxu0  ;;  %v2431_v10 = vadd.f32 %v2430_v52, %v2416_v21  ;;  %v2485_v31 = vadd.f32 %v2484_v0, %v2470_v36  ;;  %v2419_v60 = vmul.f32 %v2403_v56, %v2387_v2  ;;  %v2473_v63 = vmul.f32 %v2785_v12, %v2387_v2 }
 0x5c1   : > { %v2372_v9 = vadd.f32 %v2335_v19, %v2260_v6  ;;  %v2418_v39 = vmul.f32 %v2402_v17, %v2386_v27  ;;  %v2472_v59 = vmul.f32 %v2784_v29, %v2386_v27  ;;  %v2263_v28 = vadd.f32 %v3257_v26, %v1979_v20  ;;  %v2787_v19 = vld [vmem:[%s4524_s7 + $0xd8] sm:$0xff]  ;;  %v2408_v17 = vld [vmem:[%s4524_s7 + $0x70] sm:$0xff] }
 0x5c2   : > { %v2231_v41 = vpop.f32.mrf.mxu0  ;;  %v2432_v7 = vadd.f32 %v2431_v10, %v2417_v55  ;;  %v2486_v32 = vadd.f32 %v2485_v31, %v2471_v8  ;;  %v2389_v44 = vmax.f32 %v2373_v11, 0.0  ;;  %v2790_v29 = vld [vmem:[%s4524_s7 + $0xf0] sm:$0xff]  ;;  %v2409_v11 = vld [vmem:[%s4524_s7 + $0x78] sm:$0xff] }
 0x5c3   : > { %v2388_v33 = vmax.f32 %v2372_v9, 0.0  ;;  %v2375_v51 = vadd.f32 %v2350_v16, %v2263_v28  ;;  %v2262_v24 = vadd.f32 %v2231_v41, %v1974_v58  ;;  %v2791_v26 = vld [vmem:[%s4524_s7 + $0xf8] sm:$0xff] }
 0x5c4   : > { %v3260_v42 = vpop.f32.mrf.mxu0  ;;  %v2433_v61 = vadd.f32 %v2432_v7, %v2418_v39  ;;  %v2487_v43 = vadd.f32 %v2486_v32, %v2472_v59  ;;  %v2421_v48 = vmul.f32 %v2405_v23, %v2389_v44  ;;  %v2475_v49 = vmul.f32 %v2787_v19, %v2389_v44 }
 0x5c5   : > { %v2265_v15 = vadd.f32 %v3260_v42, %v1989_v40  ;;  %v2420_v45 = vmul.f32 %v2404_v22, %v2388_v33  ;;  %v2474_v5 = vmul.f32 %v2786_v38, %v2388_v33  ;;  %v2374_v18 = vadd.f32 %v2345_v14, %v2262_v24 }
 0x5c6   : > { %v2241_v25 = vpop.f32.mrf.mxu0  ;;  %v2434_v37 = vadd.f32 %v2433_v61, %v2419_v60  ;;  %v2488_v54 = vadd.f32 %v2487_v43, %v2473_v63  ;;  %v2391_v4 = vmax.f32 %v2375_v51, 0.0  ;;  %v2523_v63 = vpop.permute.xlu0 %2522 }
 0x5c7   : > { %v2264_v46 = vadd.f32 %v2241_v25, %v1984_v57  ;;  %v2390_v13 = vmax.f32 %v2374_v18, 0.0  ;;  %v2377_v21 = vadd.f32 %v2360_v1, %v2265_v15 }
 0x5c8   : > { %v2435_v35 = vadd.f32 %v2434_v37, %v2420_v45  ;;  %v2489_v20 = vadd.f32 %v2488_v54, %v2474_v5  ;;  %v2423_v6 = vmul.f32 %v2407_v50, %v2391_v4  ;;  %v2477_v30 = vmul.f32 %v2789_v53, %v2391_v4 }
 0x5c9   : > { %v2376_v36 = vadd.f32 %v2355_v47, %v2264_v46  ;;  %v2422_v62 = vmul.f32 %v2406_v3, %v2390_v13  ;;  %v2476_v52 = vmul.f32 %v2788_v34, %v2390_v13  ;;  %v2393_v27 = vmax.f32 %v2377_v21, 0.0 }
 0x5ca   : > { %v2436_v0 = vadd.f32 %v2435_v35, %v2421_v48  ;;  %v2490_v2 = vadd.f32 %v2489_v20, %v2475_v49 }
 0x5cb   : > { %v2392_v58 = vmax.f32 %v2376_v36, 0.0  ;;  %v2425_v9 = vmul.f32 %v2409_v11, %v2393_v27  ;;  %v2479_v14 = vmul.f32 %v2791_v26, %v2393_v27 }
 0x5cc   : > { %v2437_v55 = vadd.f32 %v2436_v0, %v2422_v62  ;;  %v2491_v56 = vadd.f32 %v2490_v2, %v2476_v52 }
 0x5cd   : > { %v2424_v16 = vmul.f32 %v2408_v17, %v2392_v58  ;;  %v2478_v8 = vmul.f32 %v2790_v29, %v2392_v58 }
 0x5ce   : > { %v2438_v10 = vadd.f32 %v2437_v55, %v2423_v6  ;;  %v2492_v31 = vadd.f32 %v2491_v56, %v2477_v30 }
 0x5d0   : > { %v2439_v40 = vadd.f32 %v2438_v10, %v2424_v16  ;;  %v2493_v12 = vadd.f32 %v2492_v31, %v2478_v8 }
 0x5d2   : > { %v2440_v39 = vadd.f32 %v2439_v40, %v2425_v9  ;;  %v2494_v59 = vadd.f32 %v2493_v12, %v2479_v14 }
 0x5d4   : > { %v2441_v28 = vrot.slane %v2440_v39, 4  ;;  %v2495_v41 = vrot.slane %v2494_v59, 4 }
 0x5d6   : > { %v2442_v57 = vadd.f32 %v2441_v28, %v2440_v39  ;;  %v2496_v60 = vadd.f32 %v2495_v41, %v2494_v59 }
 0x5d8   : > { %v2443_v7 = vrot.slane %v2442_v57, 2  ;;  %v2497_v32 = vrot.slane %v2496_v60, 2 }
 0x5da   : > { %v2444_v22 = vadd.f32 %v2443_v7, %v2442_v57  ;;  %v2498_v38 = vadd.f32 %v2497_v32, %v2496_v60 }
 0x5dc   : > { %v2445_v44 = vrot.slane %v2444_v22, 1  ;;  %v2499_v33 = vrot.slane %v2498_v38, 1 }
 0x5de   : > { %v2446_v51 = vadd.f32 %v2445_v44, %v2444_v22  ;;  %v2500_v24 = vadd.f32 %v2499_v33, %v2498_v38 }
 0x5e0   : > { %v2502_v42 = vsel %vm2501_vm5, %v2446_v51, %v2500_v24 }
 0x5e1   : > { %3294 = vmatmul.mubr.f32.vlgmr.msra.gmra.mxu1 %v2502_v42 }
 0x6a1   : > { %v2591_v61 = vpop.f32.mrf.mxu1 }
 0x6a2   : > { %v2592_v43 = vadd.f32 %v2591_v61, %v2523_v63 }
 0x6a3   : > { %v3295_v23 = vpop.f32.mrf.mxu1 }
 0x6a4   : > { %2596 = vst.msk [vmem:[%s357_s24] sm:$0x3] %vm2595_vm6, %v2592_v43 }
 0x6a5 PF: > { %s20_s13 = sadd.s32 1, %s3318_s13  }
 0x6a6   : > { %p17_p4 = scmp.ge.s32.totalorder %s20_s13, 4  }
 0x6a8   :  { %19 = sbr.rel (!%p17_p4) target bundleno = 1 (0x1), region = 97 }

</bundles_post_ra>
